<compile_context>
chip_gen: v7x
topology: tpu7x:2x2x1
jax: 0.10.0
libtpu: 0.0.40
codegen_flags: <defaults>
</compile_context>

<pallas_src>
import jax
import jax.numpy as jnp
from jax import lax
from jax.experimental import pallas as pl
from jax.experimental.pallas import tpu as pltpu


# --------------------------------------------------------------------------
# Host-side helpers
# --------------------------------------------------------------------------
def _fold_bn_into_weight(w_hwio, bn, eps):
    """Fold inference BN into the conv weight; return (Cout, kh*kw*Cin) matrix
    laid out to match the in-kernel im2col slab ordering, plus (Cout,1) bias."""
    gamma, beta, mean, var = bn
    scale = (gamma / jnp.sqrt(var + eps)).astype(jnp.float32)
    bias = (beta - mean * scale).astype(jnp.float32)
    kh, kw, ci, co = w_hwio.shape
    w = w_hwio.astype(jnp.float32) * scale.reshape(1, 1, 1, co)
    w_mat = jnp.transpose(w, (3, 0, 1, 2)).reshape(co, kh * kw * ci)
    return w_mat, bias.reshape(co, 1)


def _conv_tap_masks(h, w):
    """0/1 masks (25, 1, H*W) for the 5x5/pad-2 taps; the 3x3/pad-1 taps are
    the central subset. mask[t] is 1 where the shifted pixel is in-bounds."""
    hh = jnp.arange(h).reshape(h, 1)
    ww = jnp.arange(w).reshape(1, w)
    masks = []
    for i in range(5):
        for j in range(5):
            di, dj = i - 2, j - 2
            m = ((hh + di >= 0) & (hh + di < h) &
                 (ww + dj >= 0) & (ww + dj < w))
            masks.append(m.reshape(1, h * w))
    return jnp.stack(masks).astype(jnp.float32)        # (25, 1, H*W)


# --------------------------------------------------------------------------
# Fused whole-module kernel (one grid step = one image, (C, H*W) layout)
# --------------------------------------------------------------------------
def _make_fused_dcmsc_kernel(H, W):
    HW = H * W

    def kernel(x_ref, m_ref, w1_ref, b1_ref, w2_ref, b2_ref,
               w3_ref, b3_ref, w4_ref, b4_ref, o_ref):
        x_img = x_ref[0].astype(jnp.float32)            # (Cin, H*W)

        def shift_lanes(img, s):
            # y[:, l] = img[:, (l + s) % HW]   (s is a static python int)
            s = s % HW
            if s == 0:
                return img
            return jnp.concatenate([img[:, s:], img[:, :s]], axis=1)

        def tap(img, di, dj):
            # spatially shifted image with zero padding at the borders
            shifted = shift_lanes(img, di * W + dj)
            mask = m_ref[(di + 2) * 5 + (dj + 2)]       # (1, H*W) 0/1 f32
            return shifted * mask

        def im2col(img, k, pad):
            rows = [tap(img, i - pad, j - pad)
                    for i in range(k) for j in range(k)]
            return jnp.concatenate(rows, axis=0)         # (k*k*Cin, H*W)

        def dot_bias_relu(w_ref, slab, b_ref):
            # single long-K MXU matmul; BN scale already folded into w_ref
            y = jnp.dot(w_ref[...], slab, preferred_element_type=jnp.float32)
            return jnp.maximum(y + b_ref[...], 0.0)

        out1 = dot_bias_relu(w1_ref, im2col(x_img, 5, 2), b1_ref)        # 5x5
        out2 = dot_bias_relu(w2_ref, im2col(out1 + x_img, 3, 1), b2_ref)  # 3x3
        out3 = dot_bias_relu(w3_ref, out2 + x_img, b3_ref)               # 1x1
        slab4 = jnp.concatenate([out1, out2, out3, x_img], axis=0)       # cat
        out4 = dot_bias_relu(w4_ref, slab4, b4_ref)                      # 1x1

        o_ref[0] = out4.astype(o_ref.dtype)

    return kernel


# --------------------------------------------------------------------------
# Full module forward (NCHW in / NCHW out, like the torch module)
# --------------------------------------------------------------------------
def diversely_connected_multi_scale_convolution(x_nchw, params, eps=1e-5):
    (w1, bn1), (w2, bn2), (w3, bn3), (w4, bn4) = params
    n, cin, h, w = x_nchw.shape
    cout = w4.shape[-1]
    if n == 0 or x_nchw.size == 0:                       # degenerate guard
        return jnp.zeros((n, cout, h, w), x_nchw.dtype)

    hw = h * w
    x = x_nchw.reshape(n, cin, hw)                       # spatial on lanes

    masks = _conv_tap_masks(h, w)                        # (25, 1, hw)
    w1m, b1v = _fold_bn_into_weight(w1, bn1, eps)        # (cin, 25*cin)
    w2m, b2v = _fold_bn_into_weight(w2, bn2, eps)        # (cin,  9*cin)
    w3m, b3v = _fold_bn_into_weight(w3, bn3, eps)        # (cin,    cin)
    w4m, b4v = _fold_bn_into_weight(w4, bn4, eps)        # (cout, 4*cin)

    def full2(a):
        return pl.BlockSpec(a.shape, lambda i: (0, 0))

    kernel = _make_fused_dcmsc_kernel(h, w)
    out = pl.pallas_call(
        kernel,
        out_shape=jax.ShapeDtypeStruct((n, cout, hw), x_nchw.dtype),
        grid=(n,),
        in_specs=[
            pl.BlockSpec((1, cin, hw), lambda i: (i, 0, 0)),
            pl.BlockSpec(masks.shape, lambda i: (0, 0, 0)),
            full2(w1m), full2(b1v),
            full2(w2m), full2(b2v),
            full2(w3m), full2(b3v),
            full2(w4m), full2(b4v),
        ],
        out_specs=pl.BlockSpec((1, cout, hw), lambda i: (i, 0, 0)),
        compiler_params=pltpu.CompilerParams(
            dimension_semantics=("parallel",),
            vmem_limit_bytes=32 * 1024 * 1024),
    )(x, masks, w1m, b1v, w2m, b2v, w3m, b3v, w4m, b4v)

    return out.reshape(n, cout, h, w)


# --------------------------------------------------------------------------
# Pure-JAX reference (XLA conv, explicit BN) for correctness checking
# --------------------------------------------------------------------------
def _reference_forward(x_nchw, params, eps=1e-5):
    (w1, bn1), (w2, bn2), (w3, bn3), (w4, bn4) = params
    x = jnp.transpose(x_nchw, (0, 2, 3, 1))

    def cbr(inp, wgt, bn, pad):
        y = lax.conv_general_dilated(
            inp, wgt, window_strides=(1, 1),
            padding=((pad, pad), (pad, pad)),
            dimension_numbers=("NHWC", "HWIO", "NHWC"),
            precision=lax.Precision.HIGHEST)
        gamma, beta, mean, var = bn
        y = (y - mean) / jnp.sqrt(var + eps) * gamma + beta
        return jnp.maximum(y, 0.0)

    out1 = cbr(x, w1, bn1, 2)
    out2 = cbr(out1 + x, w2, bn2, 1)
    out3 = cbr(out2 + x, w3, bn3, 0)
    cat = jnp.concatenate([out1, out2, out3, x], axis=-1)
    outf = cbr(cat, w4, bn4, 0)
    return jnp.transpose(outf, (0, 3, 1, 2))


if __name__ == "__main__":
    key = jax.random.PRNGKey(0)
    n, c, h, w = 2, 4, 16, 16      # NCHW input, in_channels=4
    c_out = 8                      # out_channels

    ks = jax.random.split(key, 9)
    x = jax.random.normal(ks[0], (n, c, h, w), jnp.float32)

    def bn_params(k, ch):
        k1, k2, k3, k4 = jax.random.split(k, 4)
        gamma = jax.random.uniform(k1, (ch,), jnp.float32, 0.5, 1.5)
        beta = 0.1 * jax.random.normal(k2, (ch,), jnp.float32)
        mean = 0.1 * jax.random.normal(k3, (ch,), jnp.float32)
        var = jax.random.uniform(k4, (ch,), jnp.float32, 0.5, 1.5)
        return gamma, beta, mean, var

    # Weights in HWIO layout.
    w1 = 0.1 * jax.random.normal(ks[1], (5, 5, c, c), jnp.float32)
    w2 = 0.1 * jax.random.normal(ks[2], (3, 3, c, c), jnp.float32)
    w3 = 0.1 * jax.random.normal(ks[3], (1, 1, c, c), jnp.float32)
    w4 = 0.1 * jax.random.normal(ks[4], (1, 1, 4 * c, c_out), jnp.float32)
    params = ((w1, bn_params(ks[5], c)),
              (w2, bn_params(ks[6], c)),
              (w3, bn_params(ks[7], c)),
              (w4, bn_params(ks[8], c_out)))

    y = diversely_connected_multi_scale_convolution(x, params)
    y = jax.block_until_ready(y)

    y_ref = _reference_forward(x, params)
    assert y.shape == (n, c_out, h, w) and y.dtype == x.dtype
    max_err = float(jnp.max(jnp.abs(y - y_ref)))
    assert jnp.allclose(y, y_ref, atol=1e-2, rtol=1e-2), max_err

    print("KERNEL_OK")
</pallas_src>

<mosaic_0001>
module attributes {stable_mosaic.version = 11 : i64} {
  func.func @kernel(%arg0: i32, %arg1: memref<1x4x256xf32, #tpu.memory_space<vmem>>, %arg2: memref<25x1x256xf32, #tpu.memory_space<vmem>>, %arg3: memref<4x100xf32, #tpu.memory_space<vmem>>, %arg4: memref<4x1xf32, #tpu.memory_space<vmem>>, %arg5: memref<4x36xf32, #tpu.memory_space<vmem>>, %arg6: memref<4x1xf32, #tpu.memory_space<vmem>>, %arg7: memref<4x4xf32, #tpu.memory_space<vmem>>, %arg8: memref<4x1xf32, #tpu.memory_space<vmem>>, %arg9: memref<8x16xf32, #tpu.memory_space<vmem>>, %arg10: memref<8x1xf32, #tpu.memory_space<vmem>>, %arg11: memref<1x8x256xf32, #tpu.memory_space<vmem>>) attributes {dimension_semantics = [#tpu.dimension_semantics<parallel>], iteration_bounds = array<i64: 2>, scalar_prefetch = 0 : i64, scratch_operands = 0 : i64, tpu.core_type = #tpu.core_type<tc>, window_params = [{transform_indices = @transform_0, window_bounds = array<i64: 1, 4, 256>}, {pipeline_mode = #tpu.pipeline_mode<synchronous>, transform_indices = @transform_1, window_bounds = array<i64: 25, 1, 256>}, {pipeline_mode = #tpu.pipeline_mode<synchronous>, transform_indices = @transform_2, window_bounds = array<i64: 4, 100>}, {pipeline_mode = #tpu.pipeline_mode<synchronous>, transform_indices = @transform_3, window_bounds = array<i64: 4, 1>}, {pipeline_mode = #tpu.pipeline_mode<synchronous>, transform_indices = @transform_4, window_bounds = array<i64: 4, 36>}, {pipeline_mode = #tpu.pipeline_mode<synchronous>, transform_indices = @transform_5, window_bounds = array<i64: 4, 1>}, {pipeline_mode = #tpu.pipeline_mode<synchronous>, transform_indices = @transform_6, window_bounds = array<i64: 4, 4>}, {pipeline_mode = #tpu.pipeline_mode<synchronous>, transform_indices = @transform_7, window_bounds = array<i64: 4, 1>}, {pipeline_mode = #tpu.pipeline_mode<synchronous>, transform_indices = @transform_8, window_bounds = array<i64: 8, 16>}, {pipeline_mode = #tpu.pipeline_mode<synchronous>, transform_indices = @transform_9, window_bounds = array<i64: 8, 1>}, {transform_indices = @transform_10, window_bounds = array<i64: 1, 8, 256>}]} {
    %c0 = arith.constant 0 : index
    %c0_0 = arith.constant 0 : index
    %c0_1 = arith.constant 0 : index
    %0 = vector.load %arg1[%c0, %c0_0, %c0_1] : memref<1x4x256xf32, #tpu.memory_space<vmem>>, vector<1x4x256xf32>
    %1 = vector.shape_cast %0 : vector<1x4x256xf32> to vector<4x256xf32>
    %2 = vector.extract_strided_slice %1 {offsets = [0, 222], sizes = [4, 34], strides = [1, 1]} : vector<4x256xf32> to vector<4x34xf32>
    %3 = vector.extract_strided_slice %1 {offsets = [0, 0], sizes = [4, 222], strides = [1, 1]} : vector<4x256xf32> to vector<4x222xf32>
    %4 = tpu.concatenate %2, %3 in 1 : vector<4x34xf32>, vector<4x222xf32> -> vector<4x256xf32>
    %c0_2 = arith.constant 0 : index
    %c0_3 = arith.constant 0 : index
    %c0_4 = arith.constant 0 : index
    %5 = vector.load %arg2[%c0_2, %c0_3, %c0_4] : memref<25x1x256xf32, #tpu.memory_space<vmem>>, vector<1x1x256xf32>
    %6 = vector.shape_cast %5 : vector<1x1x256xf32> to vector<1x256xf32>
    %7 = vector.broadcast %6 : vector<1x256xf32> to vector<4x256xf32>
    %8 = arith.mulf %4, %7 : vector<4x256xf32>
    %9 = vector.extract_strided_slice %1 {offsets = [0, 223], sizes = [4, 33], strides = [1, 1]} : vector<4x256xf32> to vector<4x33xf32>
    %10 = vector.extract_strided_slice %1 {offsets = [0, 0], sizes = [4, 223], strides = [1, 1]} : vector<4x256xf32> to vector<4x223xf32>
    %11 = tpu.concatenate %9, %10 in 1 : vector<4x33xf32>, vector<4x223xf32> -> vector<4x256xf32>
    %c1 = arith.constant 1 : index
    %c0_5 = arith.constant 0 : index
    %c0_6 = arith.constant 0 : index
    %12 = vector.load %arg2[%c1, %c0_5, %c0_6] : memref<25x1x256xf32, #tpu.memory_space<vmem>>, vector<1x1x256xf32>
    %13 = vector.shape_cast %12 : vector<1x1x256xf32> to vector<1x256xf32>
    %14 = vector.broadcast %13 : vector<1x256xf32> to vector<4x256xf32>
    %15 = arith.mulf %11, %14 : vector<4x256xf32>
    %16 = vector.extract_strided_slice %1 {offsets = [0, 224], sizes = [4, 32], strides = [1, 1]} : vector<4x256xf32> to vector<4x32xf32>
    %17 = vector.extract_strided_slice %1 {offsets = [0, 0], sizes = [4, 224], strides = [1, 1]} : vector<4x256xf32> to vector<4x224xf32>
    %18 = tpu.concatenate %16, %17 in 1 : vector<4x32xf32>, vector<4x224xf32> -> vector<4x256xf32>
    %c2 = arith.constant 2 : index
    %c0_7 = arith.constant 0 : index
    %c0_8 = arith.constant 0 : index
    %19 = vector.load %arg2[%c2, %c0_7, %c0_8] : memref<25x1x256xf32, #tpu.memory_space<vmem>>, vector<1x1x256xf32>
    %20 = vector.shape_cast %19 : vector<1x1x256xf32> to vector<1x256xf32>
    %21 = vector.broadcast %20 : vector<1x256xf32> to vector<4x256xf32>
    %22 = arith.mulf %18, %21 : vector<4x256xf32>
    %23 = vector.extract_strided_slice %1 {offsets = [0, 225], sizes = [4, 31], strides = [1, 1]} : vector<4x256xf32> to vector<4x31xf32>
    %24 = vector.extract_strided_slice %1 {offsets = [0, 0], sizes = [4, 225], strides = [1, 1]} : vector<4x256xf32> to vector<4x225xf32>
    %25 = tpu.concatenate %23, %24 in 1 : vector<4x31xf32>, vector<4x225xf32> -> vector<4x256xf32>
    %c3 = arith.constant 3 : index
    %c0_9 = arith.constant 0 : index
    %c0_10 = arith.constant 0 : index
    %26 = vector.load %arg2[%c3, %c0_9, %c0_10] : memref<25x1x256xf32, #tpu.memory_space<vmem>>, vector<1x1x256xf32>
    %27 = vector.shape_cast %26 : vector<1x1x256xf32> to vector<1x256xf32>
    %28 = vector.broadcast %27 : vector<1x256xf32> to vector<4x256xf32>
    %29 = arith.mulf %25, %28 : vector<4x256xf32>
    %30 = vector.extract_strided_slice %1 {offsets = [0, 226], sizes = [4, 30], strides = [1, 1]} : vector<4x256xf32> to vector<4x30xf32>
    %31 = vector.extract_strided_slice %1 {offsets = [0, 0], sizes = [4, 226], strides = [1, 1]} : vector<4x256xf32> to vector<4x226xf32>
    %32 = tpu.concatenate %30, %31 in 1 : vector<4x30xf32>, vector<4x226xf32> -> vector<4x256xf32>
    %c4 = arith.constant 4 : index
    %c0_11 = arith.constant 0 : index
    %c0_12 = arith.constant 0 : index
    %33 = vector.load %arg2[%c4, %c0_11, %c0_12] : memref<25x1x256xf32, #tpu.memory_space<vmem>>, vector<1x1x256xf32>
    %34 = vector.shape_cast %33 : vector<1x1x256xf32> to vector<1x256xf32>
    %35 = vector.broadcast %34 : vector<1x256xf32> to vector<4x256xf32>
    %36 = arith.mulf %32, %35 : vector<4x256xf32>
    %37 = vector.extract_strided_slice %1 {offsets = [0, 238], sizes = [4, 18], strides = [1, 1]} : vector<4x256xf32> to vector<4x18xf32>
    %38 = vector.extract_strided_slice %1 {offsets = [0, 0], sizes = [4, 238], strides = [1, 1]} : vector<4x256xf32> to vector<4x238xf32>
    %39 = tpu.concatenate %37, %38 in 1 : vector<4x18xf32>, vector<4x238xf32> -> vector<4x256xf32>
    %c5 = arith.constant 5 : index
    %c0_13 = arith.constant 0 : index
    %c0_14 = arith.constant 0 : index
    %40 = vector.load %arg2[%c5, %c0_13, %c0_14] : memref<25x1x256xf32, #tpu.memory_space<vmem>>, vector<1x1x256xf32>
    %41 = vector.shape_cast %40 : vector<1x1x256xf32> to vector<1x256xf32>
    %42 = vector.broadcast %41 : vector<1x256xf32> to vector<4x256xf32>
    %43 = arith.mulf %39, %42 : vector<4x256xf32>
    %44 = vector.extract_strided_slice %1 {offsets = [0, 239], sizes = [4, 17], strides = [1, 1]} : vector<4x256xf32> to vector<4x17xf32>
    %45 = vector.extract_strided_slice %1 {offsets = [0, 0], sizes = [4, 239], strides = [1, 1]} : vector<4x256xf32> to vector<4x239xf32>
    %46 = tpu.concatenate %44, %45 in 1 : vector<4x17xf32>, vector<4x239xf32> -> vector<4x256xf32>
    %c6 = arith.constant 6 : index
    %c0_15 = arith.constant 0 : index
    %c0_16 = arith.constant 0 : index
    %47 = vector.load %arg2[%c6, %c0_15, %c0_16] : memref<25x1x256xf32, #tpu.memory_space<vmem>>, vector<1x1x256xf32>
    %48 = vector.shape_cast %47 : vector<1x1x256xf32> to vector<1x256xf32>
    %49 = vector.broadcast %48 : vector<1x256xf32> to vector<4x256xf32>
    %50 = arith.mulf %46, %49 : vector<4x256xf32>
    %51 = vector.extract_strided_slice %1 {offsets = [0, 240], sizes = [4, 16], strides = [1, 1]} : vector<4x256xf32> to vector<4x16xf32>
    %52 = vector.extract_strided_slice %1 {offsets = [0, 0], sizes = [4, 240], strides = [1, 1]} : vector<4x256xf32> to vector<4x240xf32>
    %53 = tpu.concatenate %51, %52 in 1 : vector<4x16xf32>, vector<4x240xf32> -> vector<4x256xf32>
    %c7 = arith.constant 7 : index
    %c0_17 = arith.constant 0 : index
    %c0_18 = arith.constant 0 : index
    %54 = vector.load %arg2[%c7, %c0_17, %c0_18] : memref<25x1x256xf32, #tpu.memory_space<vmem>>, vector<1x1x256xf32>
    %55 = vector.shape_cast %54 : vector<1x1x256xf32> to vector<1x256xf32>
    %56 = vector.broadcast %55 : vector<1x256xf32> to vector<4x256xf32>
    %57 = arith.mulf %53, %56 : vector<4x256xf32>
    %58 = vector.extract_strided_slice %1 {offsets = [0, 241], sizes = [4, 15], strides = [1, 1]} : vector<4x256xf32> to vector<4x15xf32>
    %59 = vector.extract_strided_slice %1 {offsets = [0, 0], sizes = [4, 241], strides = [1, 1]} : vector<4x256xf32> to vector<4x241xf32>
    %60 = tpu.concatenate %58, %59 in 1 : vector<4x15xf32>, vector<4x241xf32> -> vector<4x256xf32>
    %c8 = arith.constant 8 : index
    %c0_19 = arith.constant 0 : index
    %c0_20 = arith.constant 0 : index
    %61 = vector.load %arg2[%c8, %c0_19, %c0_20] : memref<25x1x256xf32, #tpu.memory_space<vmem>>, vector<1x1x256xf32>
    %62 = vector.shape_cast %61 : vector<1x1x256xf32> to vector<1x256xf32>
    %63 = vector.broadcast %62 : vector<1x256xf32> to vector<4x256xf32>
    %64 = arith.mulf %60, %63 : vector<4x256xf32>
    %65 = vector.extract_strided_slice %1 {offsets = [0, 242], sizes = [4, 14], strides = [1, 1]} : vector<4x256xf32> to vector<4x14xf32>
    %66 = vector.extract_strided_slice %1 {offsets = [0, 0], sizes = [4, 242], strides = [1, 1]} : vector<4x256xf32> to vector<4x242xf32>
    %67 = tpu.concatenate %65, %66 in 1 : vector<4x14xf32>, vector<4x242xf32> -> vector<4x256xf32>
    %c9 = arith.constant 9 : index
    %c0_21 = arith.constant 0 : index
    %c0_22 = arith.constant 0 : index
    %68 = vector.load %arg2[%c9, %c0_21, %c0_22] : memref<25x1x256xf32, #tpu.memory_space<vmem>>, vector<1x1x256xf32>
    %69 = vector.shape_cast %68 : vector<1x1x256xf32> to vector<1x256xf32>
    %70 = vector.broadcast %69 : vector<1x256xf32> to vector<4x256xf32>
    %71 = arith.mulf %67, %70 : vector<4x256xf32>
    %72 = vector.extract_strided_slice %1 {offsets = [0, 254], sizes = [4, 2], strides = [1, 1]} : vector<4x256xf32> to vector<4x2xf32>
    %73 = vector.extract_strided_slice %1 {offsets = [0, 0], sizes = [4, 254], strides = [1, 1]} : vector<4x256xf32> to vector<4x254xf32>
    %74 = tpu.concatenate %72, %73 in 1 : vector<4x2xf32>, vector<4x254xf32> -> vector<4x256xf32>
    %c10 = arith.constant 10 : index
    %c0_23 = arith.constant 0 : index
    %c0_24 = arith.constant 0 : index
    %75 = vector.load %arg2[%c10, %c0_23, %c0_24] : memref<25x1x256xf32, #tpu.memory_space<vmem>>, vector<1x1x256xf32>
    %76 = vector.shape_cast %75 : vector<1x1x256xf32> to vector<1x256xf32>
    %77 = vector.broadcast %76 : vector<1x256xf32> to vector<4x256xf32>
    %78 = arith.mulf %74, %77 : vector<4x256xf32>
    %79 = vector.extract_strided_slice %1 {offsets = [0, 255], sizes = [4, 1], strides = [1, 1]} : vector<4x256xf32> to vector<4x1xf32>
    %80 = vector.extract_strided_slice %1 {offsets = [0, 0], sizes = [4, 255], strides = [1, 1]} : vector<4x256xf32> to vector<4x255xf32>
    %81 = tpu.concatenate %79, %80 in 1 : vector<4x1xf32>, vector<4x255xf32> -> vector<4x256xf32>
    %c11 = arith.constant 11 : index
    %c0_25 = arith.constant 0 : index
    %c0_26 = arith.constant 0 : index
    %82 = vector.load %arg2[%c11, %c0_25, %c0_26] : memref<25x1x256xf32, #tpu.memory_space<vmem>>, vector<1x1x256xf32>
    %83 = vector.shape_cast %82 : vector<1x1x256xf32> to vector<1x256xf32>
    %84 = vector.broadcast %83 : vector<1x256xf32> to vector<4x256xf32>
    %85 = arith.mulf %81, %84 : vector<4x256xf32>
    %c12 = arith.constant 12 : index
    %c0_27 = arith.constant 0 : index
    %c0_28 = arith.constant 0 : index
    %86 = vector.load %arg2[%c12, %c0_27, %c0_28] : memref<25x1x256xf32, #tpu.memory_space<vmem>>, vector<1x1x256xf32>
    %87 = vector.shape_cast %86 : vector<1x1x256xf32> to vector<1x256xf32>
    %88 = vector.broadcast %87 : vector<1x256xf32> to vector<4x256xf32>
    %89 = arith.mulf %1, %88 : vector<4x256xf32>
    %90 = vector.extract_strided_slice %1 {offsets = [0, 1], sizes = [4, 255], strides = [1, 1]} : vector<4x256xf32> to vector<4x255xf32>
    %91 = vector.extract_strided_slice %1 {offsets = [0, 0], sizes = [4, 1], strides = [1, 1]} : vector<4x256xf32> to vector<4x1xf32>
    %92 = tpu.concatenate %90, %91 in 1 : vector<4x255xf32>, vector<4x1xf32> -> vector<4x256xf32>
    %c13 = arith.constant 13 : index
    %c0_29 = arith.constant 0 : index
    %c0_30 = arith.constant 0 : index
    %93 = vector.load %arg2[%c13, %c0_29, %c0_30] : memref<25x1x256xf32, #tpu.memory_space<vmem>>, vector<1x1x256xf32>
    %94 = vector.shape_cast %93 : vector<1x1x256xf32> to vector<1x256xf32>
    %95 = vector.broadcast %94 : vector<1x256xf32> to vector<4x256xf32>
    %96 = arith.mulf %92, %95 : vector<4x256xf32>
    %97 = vector.extract_strided_slice %1 {offsets = [0, 2], sizes = [4, 254], strides = [1, 1]} : vector<4x256xf32> to vector<4x254xf32>
    %98 = vector.extract_strided_slice %1 {offsets = [0, 0], sizes = [4, 2], strides = [1, 1]} : vector<4x256xf32> to vector<4x2xf32>
    %99 = tpu.concatenate %97, %98 in 1 : vector<4x254xf32>, vector<4x2xf32> -> vector<4x256xf32>
    %c14 = arith.constant 14 : index
    %c0_31 = arith.constant 0 : index
    %c0_32 = arith.constant 0 : index
    %100 = vector.load %arg2[%c14, %c0_31, %c0_32] : memref<25x1x256xf32, #tpu.memory_space<vmem>>, vector<1x1x256xf32>
    %101 = vector.shape_cast %100 : vector<1x1x256xf32> to vector<1x256xf32>
    %102 = vector.broadcast %101 : vector<1x256xf32> to vector<4x256xf32>
    %103 = arith.mulf %99, %102 : vector<4x256xf32>
    %104 = vector.extract_strided_slice %1 {offsets = [0, 14], sizes = [4, 242], strides = [1, 1]} : vector<4x256xf32> to vector<4x242xf32>
    %105 = vector.extract_strided_slice %1 {offsets = [0, 0], sizes = [4, 14], strides = [1, 1]} : vector<4x256xf32> to vector<4x14xf32>
    %106 = tpu.concatenate %104, %105 in 1 : vector<4x242xf32>, vector<4x14xf32> -> vector<4x256xf32>
    %c15 = arith.constant 15 : index
    %c0_33 = arith.constant 0 : index
    %c0_34 = arith.constant 0 : index
    %107 = vector.load %arg2[%c15, %c0_33, %c0_34] : memref<25x1x256xf32, #tpu.memory_space<vmem>>, vector<1x1x256xf32>
    %108 = vector.shape_cast %107 : vector<1x1x256xf32> to vector<1x256xf32>
    %109 = vector.broadcast %108 : vector<1x256xf32> to vector<4x256xf32>
    %110 = arith.mulf %106, %109 : vector<4x256xf32>
    %111 = vector.extract_strided_slice %1 {offsets = [0, 15], sizes = [4, 241], strides = [1, 1]} : vector<4x256xf32> to vector<4x241xf32>
    %112 = vector.extract_strided_slice %1 {offsets = [0, 0], sizes = [4, 15], strides = [1, 1]} : vector<4x256xf32> to vector<4x15xf32>
    %113 = tpu.concatenate %111, %112 in 1 : vector<4x241xf32>, vector<4x15xf32> -> vector<4x256xf32>
    %c16 = arith.constant 16 : index
    %c0_35 = arith.constant 0 : index
    %c0_36 = arith.constant 0 : index
    %114 = vector.load %arg2[%c16, %c0_35, %c0_36] : memref<25x1x256xf32, #tpu.memory_space<vmem>>, vector<1x1x256xf32>
    %115 = vector.shape_cast %114 : vector<1x1x256xf32> to vector<1x256xf32>
    %116 = vector.broadcast %115 : vector<1x256xf32> to vector<4x256xf32>
    %117 = arith.mulf %113, %116 : vector<4x256xf32>
    %118 = vector.extract_strided_slice %1 {offsets = [0, 16], sizes = [4, 240], strides = [1, 1]} : vector<4x256xf32> to vector<4x240xf32>
    %119 = vector.extract_strided_slice %1 {offsets = [0, 0], sizes = [4, 16], strides = [1, 1]} : vector<4x256xf32> to vector<4x16xf32>
    %120 = tpu.concatenate %118, %119 in 1 : vector<4x240xf32>, vector<4x16xf32> -> vector<4x256xf32>
    %c17 = arith.constant 17 : index
    %c0_37 = arith.constant 0 : index
    %c0_38 = arith.constant 0 : index
    %121 = vector.load %arg2[%c17, %c0_37, %c0_38] : memref<25x1x256xf32, #tpu.memory_space<vmem>>, vector<1x1x256xf32>
    %122 = vector.shape_cast %121 : vector<1x1x256xf32> to vector<1x256xf32>
    %123 = vector.broadcast %122 : vector<1x256xf32> to vector<4x256xf32>
    %124 = arith.mulf %120, %123 : vector<4x256xf32>
    %125 = vector.extract_strided_slice %1 {offsets = [0, 17], sizes = [4, 239], strides = [1, 1]} : vector<4x256xf32> to vector<4x239xf32>
    %126 = vector.extract_strided_slice %1 {offsets = [0, 0], sizes = [4, 17], strides = [1, 1]} : vector<4x256xf32> to vector<4x17xf32>
    %127 = tpu.concatenate %125, %126 in 1 : vector<4x239xf32>, vector<4x17xf32> -> vector<4x256xf32>
    %c18 = arith.constant 18 : index
    %c0_39 = arith.constant 0 : index
    %c0_40 = arith.constant 0 : index
    %128 = vector.load %arg2[%c18, %c0_39, %c0_40] : memref<25x1x256xf32, #tpu.memory_space<vmem>>, vector<1x1x256xf32>
    %129 = vector.shape_cast %128 : vector<1x1x256xf32> to vector<1x256xf32>
    %130 = vector.broadcast %129 : vector<1x256xf32> to vector<4x256xf32>
    %131 = arith.mulf %127, %130 : vector<4x256xf32>
    %132 = vector.extract_strided_slice %1 {offsets = [0, 18], sizes = [4, 238], strides = [1, 1]} : vector<4x256xf32> to vector<4x238xf32>
    %133 = vector.extract_strided_slice %1 {offsets = [0, 0], sizes = [4, 18], strides = [1, 1]} : vector<4x256xf32> to vector<4x18xf32>
    %134 = tpu.concatenate %132, %133 in 1 : vector<4x238xf32>, vector<4x18xf32> -> vector<4x256xf32>
    %c19 = arith.constant 19 : index
    %c0_41 = arith.constant 0 : index
    %c0_42 = arith.constant 0 : index
    %135 = vector.load %arg2[%c19, %c0_41, %c0_42] : memref<25x1x256xf32, #tpu.memory_space<vmem>>, vector<1x1x256xf32>
    %136 = vector.shape_cast %135 : vector<1x1x256xf32> to vector<1x256xf32>
    %137 = vector.broadcast %136 : vector<1x256xf32> to vector<4x256xf32>
    %138 = arith.mulf %134, %137 : vector<4x256xf32>
    %139 = vector.extract_strided_slice %1 {offsets = [0, 30], sizes = [4, 226], strides = [1, 1]} : vector<4x256xf32> to vector<4x226xf32>
    %140 = vector.extract_strided_slice %1 {offsets = [0, 0], sizes = [4, 30], strides = [1, 1]} : vector<4x256xf32> to vector<4x30xf32>
    %141 = tpu.concatenate %139, %140 in 1 : vector<4x226xf32>, vector<4x30xf32> -> vector<4x256xf32>
    %c20 = arith.constant 20 : index
    %c0_43 = arith.constant 0 : index
    %c0_44 = arith.constant 0 : index
    %142 = vector.load %arg2[%c20, %c0_43, %c0_44] : memref<25x1x256xf32, #tpu.memory_space<vmem>>, vector<1x1x256xf32>
    %143 = vector.shape_cast %142 : vector<1x1x256xf32> to vector<1x256xf32>
    %144 = vector.broadcast %143 : vector<1x256xf32> to vector<4x256xf32>
    %145 = arith.mulf %141, %144 : vector<4x256xf32>
    %146 = vector.extract_strided_slice %1 {offsets = [0, 31], sizes = [4, 225], strides = [1, 1]} : vector<4x256xf32> to vector<4x225xf32>
    %147 = vector.extract_strided_slice %1 {offsets = [0, 0], sizes = [4, 31], strides = [1, 1]} : vector<4x256xf32> to vector<4x31xf32>
    %148 = tpu.concatenate %146, %147 in 1 : vector<4x225xf32>, vector<4x31xf32> -> vector<4x256xf32>
    %c21 = arith.constant 21 : index
    %c0_45 = arith.constant 0 : index
    %c0_46 = arith.constant 0 : index
    %149 = vector.load %arg2[%c21, %c0_45, %c0_46] : memref<25x1x256xf32, #tpu.memory_space<vmem>>, vector<1x1x256xf32>
    %150 = vector.shape_cast %149 : vector<1x1x256xf32> to vector<1x256xf32>
    %151 = vector.broadcast %150 : vector<1x256xf32> to vector<4x256xf32>
    %152 = arith.mulf %148, %151 : vector<4x256xf32>
    %153 = vector.extract_strided_slice %1 {offsets = [0, 32], sizes = [4, 224], strides = [1, 1]} : vector<4x256xf32> to vector<4x224xf32>
    %154 = vector.extract_strided_slice %1 {offsets = [0, 0], sizes = [4, 32], strides = [1, 1]} : vector<4x256xf32> to vector<4x32xf32>
    %155 = tpu.concatenate %153, %154 in 1 : vector<4x224xf32>, vector<4x32xf32> -> vector<4x256xf32>
    %c22 = arith.constant 22 : index
    %c0_47 = arith.constant 0 : index
    %c0_48 = arith.constant 0 : index
    %156 = vector.load %arg2[%c22, %c0_47, %c0_48] : memref<25x1x256xf32, #tpu.memory_space<vmem>>, vector<1x1x256xf32>
    %157 = vector.shape_cast %156 : vector<1x1x256xf32> to vector<1x256xf32>
    %158 = vector.broadcast %157 : vector<1x256xf32> to vector<4x256xf32>
    %159 = arith.mulf %155, %158 : vector<4x256xf32>
    %160 = vector.extract_strided_slice %1 {offsets = [0, 33], sizes = [4, 223], strides = [1, 1]} : vector<4x256xf32> to vector<4x223xf32>
    %161 = vector.extract_strided_slice %1 {offsets = [0, 0], sizes = [4, 33], strides = [1, 1]} : vector<4x256xf32> to vector<4x33xf32>
    %162 = tpu.concatenate %160, %161 in 1 : vector<4x223xf32>, vector<4x33xf32> -> vector<4x256xf32>
    %c23 = arith.constant 23 : index
    %c0_49 = arith.constant 0 : index
    %c0_50 = arith.constant 0 : index
    %163 = vector.load %arg2[%c23, %c0_49, %c0_50] : memref<25x1x256xf32, #tpu.memory_space<vmem>>, vector<1x1x256xf32>
    %164 = vector.shape_cast %163 : vector<1x1x256xf32> to vector<1x256xf32>
    %165 = vector.broadcast %164 : vector<1x256xf32> to vector<4x256xf32>
    %166 = arith.mulf %162, %165 : vector<4x256xf32>
    %167 = vector.extract_strided_slice %1 {offsets = [0, 34], sizes = [4, 222], strides = [1, 1]} : vector<4x256xf32> to vector<4x222xf32>
    %168 = vector.extract_strided_slice %1 {offsets = [0, 0], sizes = [4, 34], strides = [1, 1]} : vector<4x256xf32> to vector<4x34xf32>
    %169 = tpu.concatenate %167, %168 in 1 : vector<4x222xf32>, vector<4x34xf32> -> vector<4x256xf32>
    %c24 = arith.constant 24 : index
    %c0_51 = arith.constant 0 : index
    %c0_52 = arith.constant 0 : index
    %170 = vector.load %arg2[%c24, %c0_51, %c0_52] : memref<25x1x256xf32, #tpu.memory_space<vmem>>, vector<1x1x256xf32>
    %171 = vector.shape_cast %170 : vector<1x1x256xf32> to vector<1x256xf32>
    %172 = vector.broadcast %171 : vector<1x256xf32> to vector<4x256xf32>
    %173 = arith.mulf %169, %172 : vector<4x256xf32>
    %174 = tpu.concatenate %8, %15, %22, %29, %36, %43, %50, %57, %64, %71, %78, %85, %89, %96, %103, %110 in 0 : vector<4x256xf32>, vector<4x256xf32>, vector<4x256xf32>, vector<4x256xf32>, vector<4x256xf32>, vector<4x256xf32>, vector<4x256xf32>, vector<4x256xf32>, vector<4x256xf32>, vector<4x256xf32>, vector<4x256xf32>, vector<4x256xf32>, vector<4x256xf32>, vector<4x256xf32>, vector<4x256xf32>, vector<4x256xf32> -> vector<64x256xf32>
    %175 = tpu.concatenate %117, %124, %131, %138, %145, %152, %159, %166, %173 in 0 : vector<4x256xf32>, vector<4x256xf32>, vector<4x256xf32>, vector<4x256xf32>, vector<4x256xf32>, vector<4x256xf32>, vector<4x256xf32>, vector<4x256xf32>, vector<4x256xf32> -> vector<36x256xf32>
    %176 = tpu.concatenate %174, %175 in 0 : vector<64x256xf32>, vector<36x256xf32> -> vector<100x256xf32>
    %c0_53 = arith.constant 0 : index
    %c0_54 = arith.constant 0 : index
    %177 = vector.load %arg3[%c0_53, %c0_54] : memref<4x100xf32, #tpu.memory_space<vmem>>, vector<4x100xf32>
    %cst = arith.constant dense<0.000000e+00> : vector<4x256xf32>
    %178 = tpu.matmul %177, %176, %cst {dimension_numbers = #tpu.dot_dimension_numbers<[1], [0], [0], [1], [0, 0, 1, 1], [], []>} : vector<4x100xf32>, vector<100x256xf32>, vector<4x256xf32> -> vector<4x256xf32>
    %c0_55 = arith.constant 0 : index
    %c0_56 = arith.constant 0 : index
    %179 = vector.load %arg4[%c0_55, %c0_56] : memref<4x1xf32, #tpu.memory_space<vmem>>, vector<4x1xf32>
    %180 = vector.broadcast %179 : vector<4x1xf32> to vector<4x256xf32>
    %181 = arith.addf %178, %180 : vector<4x256xf32>
    %cst_57 = arith.constant 0.000000e+00 : f32
    %182 = vector.broadcast %cst_57 : f32 to vector<4x256xf32>
    %183 = arith.maximumf %181, %182 : vector<4x256xf32>
    %184 = arith.addf %183, %1 : vector<4x256xf32>
    %185 = vector.extract_strided_slice %184 {offsets = [0, 239], sizes = [4, 17], strides = [1, 1]} : vector<4x256xf32> to vector<4x17xf32>
    %186 = vector.extract_strided_slice %184 {offsets = [0, 0], sizes = [4, 239], strides = [1, 1]} : vector<4x256xf32> to vector<4x239xf32>
    %187 = tpu.concatenate %185, %186 in 1 : vector<4x17xf32>, vector<4x239xf32> -> vector<4x256xf32>
    %c6_58 = arith.constant 6 : index
    %c0_59 = arith.constant 0 : index
    %c0_60 = arith.constant 0 : index
    %188 = vector.load %arg2[%c6_58, %c0_59, %c0_60] : memref<25x1x256xf32, #tpu.memory_space<vmem>>, vector<1x1x256xf32>
    %189 = vector.shape_cast %188 : vector<1x1x256xf32> to vector<1x256xf32>
    %190 = vector.broadcast %189 : vector<1x256xf32> to vector<4x256xf32>
    %191 = arith.mulf %187, %190 : vector<4x256xf32>
    %192 = vector.extract_strided_slice %184 {offsets = [0, 240], sizes = [4, 16], strides = [1, 1]} : vector<4x256xf32> to vector<4x16xf32>
    %193 = vector.extract_strided_slice %184 {offsets = [0, 0], sizes = [4, 240], strides = [1, 1]} : vector<4x256xf32> to vector<4x240xf32>
    %194 = tpu.concatenate %192, %193 in 1 : vector<4x16xf32>, vector<4x240xf32> -> vector<4x256xf32>
    %c7_61 = arith.constant 7 : index
    %c0_62 = arith.constant 0 : index
    %c0_63 = arith.constant 0 : index
    %195 = vector.load %arg2[%c7_61, %c0_62, %c0_63] : memref<25x1x256xf32, #tpu.memory_space<vmem>>, vector<1x1x256xf32>
    %196 = vector.shape_cast %195 : vector<1x1x256xf32> to vector<1x256xf32>
    %197 = vector.broadcast %196 : vector<1x256xf32> to vector<4x256xf32>
    %198 = arith.mulf %194, %197 : vector<4x256xf32>
    %199 = vector.extract_strided_slice %184 {offsets = [0, 241], sizes = [4, 15], strides = [1, 1]} : vector<4x256xf32> to vector<4x15xf32>
    %200 = vector.extract_strided_slice %184 {offsets = [0, 0], sizes = [4, 241], strides = [1, 1]} : vector<4x256xf32> to vector<4x241xf32>
    %201 = tpu.concatenate %199, %200 in 1 : vector<4x15xf32>, vector<4x241xf32> -> vector<4x256xf32>
    %c8_64 = arith.constant 8 : index
    %c0_65 = arith.constant 0 : index
    %c0_66 = arith.constant 0 : index
    %202 = vector.load %arg2[%c8_64, %c0_65, %c0_66] : memref<25x1x256xf32, #tpu.memory_space<vmem>>, vector<1x1x256xf32>
    %203 = vector.shape_cast %202 : vector<1x1x256xf32> to vector<1x256xf32>
    %204 = vector.broadcast %203 : vector<1x256xf32> to vector<4x256xf32>
    %205 = arith.mulf %201, %204 : vector<4x256xf32>
    %206 = vector.extract_strided_slice %184 {offsets = [0, 255], sizes = [4, 1], strides = [1, 1]} : vector<4x256xf32> to vector<4x1xf32>
    %207 = vector.extract_strided_slice %184 {offsets = [0, 0], sizes = [4, 255], strides = [1, 1]} : vector<4x256xf32> to vector<4x255xf32>
    %208 = tpu.concatenate %206, %207 in 1 : vector<4x1xf32>, vector<4x255xf32> -> vector<4x256xf32>
    %c11_67 = arith.constant 11 : index
    %c0_68 = arith.constant 0 : index
    %c0_69 = arith.constant 0 : index
    %209 = vector.load %arg2[%c11_67, %c0_68, %c0_69] : memref<25x1x256xf32, #tpu.memory_space<vmem>>, vector<1x1x256xf32>
    %210 = vector.shape_cast %209 : vector<1x1x256xf32> to vector<1x256xf32>
    %211 = vector.broadcast %210 : vector<1x256xf32> to vector<4x256xf32>
    %212 = arith.mulf %208, %211 : vector<4x256xf32>
    %c12_70 = arith.constant 12 : index
    %c0_71 = arith.constant 0 : index
    %c0_72 = arith.constant 0 : index
    %213 = vector.load %arg2[%c12_70, %c0_71, %c0_72] : memref<25x1x256xf32, #tpu.memory_space<vmem>>, vector<1x1x256xf32>
    %214 = vector.shape_cast %213 : vector<1x1x256xf32> to vector<1x256xf32>
    %215 = vector.broadcast %214 : vector<1x256xf32> to vector<4x256xf32>
    %216 = arith.mulf %184, %215 : vector<4x256xf32>
    %217 = vector.extract_strided_slice %184 {offsets = [0, 1], sizes = [4, 255], strides = [1, 1]} : vector<4x256xf32> to vector<4x255xf32>
    %218 = vector.extract_strided_slice %184 {offsets = [0, 0], sizes = [4, 1], strides = [1, 1]} : vector<4x256xf32> to vector<4x1xf32>
    %219 = tpu.concatenate %217, %218 in 1 : vector<4x255xf32>, vector<4x1xf32> -> vector<4x256xf32>
    %c13_73 = arith.constant 13 : index
    %c0_74 = arith.constant 0 : index
    %c0_75 = arith.constant 0 : index
    %220 = vector.load %arg2[%c13_73, %c0_74, %c0_75] : memref<25x1x256xf32, #tpu.memory_space<vmem>>, vector<1x1x256xf32>
    %221 = vector.shape_cast %220 : vector<1x1x256xf32> to vector<1x256xf32>
    %222 = vector.broadcast %221 : vector<1x256xf32> to vector<4x256xf32>
    %223 = arith.mulf %219, %222 : vector<4x256xf32>
    %224 = vector.extract_strided_slice %184 {offsets = [0, 15], sizes = [4, 241], strides = [1, 1]} : vector<4x256xf32> to vector<4x241xf32>
    %225 = vector.extract_strided_slice %184 {offsets = [0, 0], sizes = [4, 15], strides = [1, 1]} : vector<4x256xf32> to vector<4x15xf32>
    %226 = tpu.concatenate %224, %225 in 1 : vector<4x241xf32>, vector<4x15xf32> -> vector<4x256xf32>
    %c16_76 = arith.constant 16 : index
    %c0_77 = arith.constant 0 : index
    %c0_78 = arith.constant 0 : index
    %227 = vector.load %arg2[%c16_76, %c0_77, %c0_78] : memref<25x1x256xf32, #tpu.memory_space<vmem>>, vector<1x1x256xf32>
    %228 = vector.shape_cast %227 : vector<1x1x256xf32> to vector<1x256xf32>
    %229 = vector.broadcast %228 : vector<1x256xf32> to vector<4x256xf32>
    %230 = arith.mulf %226, %229 : vector<4x256xf32>
    %231 = vector.extract_strided_slice %184 {offsets = [0, 16], sizes = [4, 240], strides = [1, 1]} : vector<4x256xf32> to vector<4x240xf32>
    %232 = vector.extract_strided_slice %184 {offsets = [0, 0], sizes = [4, 16], strides = [1, 1]} : vector<4x256xf32> to vector<4x16xf32>
    %233 = tpu.concatenate %231, %232 in 1 : vector<4x240xf32>, vector<4x16xf32> -> vector<4x256xf32>
    %c17_79 = arith.constant 17 : index
    %c0_80 = arith.constant 0 : index
    %c0_81 = arith.constant 0 : index
    %234 = vector.load %arg2[%c17_79, %c0_80, %c0_81] : memref<25x1x256xf32, #tpu.memory_space<vmem>>, vector<1x1x256xf32>
    %235 = vector.shape_cast %234 : vector<1x1x256xf32> to vector<1x256xf32>
    %236 = vector.broadcast %235 : vector<1x256xf32> to vector<4x256xf32>
    %237 = arith.mulf %233, %236 : vector<4x256xf32>
    %238 = vector.extract_strided_slice %184 {offsets = [0, 17], sizes = [4, 239], strides = [1, 1]} : vector<4x256xf32> to vector<4x239xf32>
    %239 = vector.extract_strided_slice %184 {offsets = [0, 0], sizes = [4, 17], strides = [1, 1]} : vector<4x256xf32> to vector<4x17xf32>
    %240 = tpu.concatenate %238, %239 in 1 : vector<4x239xf32>, vector<4x17xf32> -> vector<4x256xf32>
    %c18_82 = arith.constant 18 : index
    %c0_83 = arith.constant 0 : index
    %c0_84 = arith.constant 0 : index
    %241 = vector.load %arg2[%c18_82, %c0_83, %c0_84] : memref<25x1x256xf32, #tpu.memory_space<vmem>>, vector<1x1x256xf32>
    %242 = vector.shape_cast %241 : vector<1x1x256xf32> to vector<1x256xf32>
    %243 = vector.broadcast %242 : vector<1x256xf32> to vector<4x256xf32>
    %244 = arith.mulf %240, %243 : vector<4x256xf32>
    %245 = tpu.concatenate %191, %198, %205, %212, %216, %223, %230, %237, %244 in 0 : vector<4x256xf32>, vector<4x256xf32>, vector<4x256xf32>, vector<4x256xf32>, vector<4x256xf32>, vector<4x256xf32>, vector<4x256xf32>, vector<4x256xf32>, vector<4x256xf32> -> vector<36x256xf32>
    %c0_85 = arith.constant 0 : index
    %c0_86 = arith.constant 0 : index
    %246 = vector.load %arg5[%c0_85, %c0_86] : memref<4x36xf32, #tpu.memory_space<vmem>>, vector<4x36xf32>
    %cst_87 = arith.constant dense<0.000000e+00> : vector<4x256xf32>
    %247 = tpu.matmul %246, %245, %cst_87 {dimension_numbers = #tpu.dot_dimension_numbers<[1], [0], [0], [1], [0, 0, 1, 1], [], []>} : vector<4x36xf32>, vector<36x256xf32>, vector<4x256xf32> -> vector<4x256xf32>
    %c0_88 = arith.constant 0 : index
    %c0_89 = arith.constant 0 : index
    %248 = vector.load %arg6[%c0_88, %c0_89] : memref<4x1xf32, #tpu.memory_space<vmem>>, vector<4x1xf32>
    %249 = vector.broadcast %248 : vector<4x1xf32> to vector<4x256xf32>
    %250 = arith.addf %247, %249 : vector<4x256xf32>
    %cst_90 = arith.constant 0.000000e+00 : f32
    %251 = vector.broadcast %cst_90 : f32 to vector<4x256xf32>
    %252 = arith.maximumf %250, %251 : vector<4x256xf32>
    %253 = arith.addf %252, %1 : vector<4x256xf32>
    %c0_91 = arith.constant 0 : index
    %c0_92 = arith.constant 0 : index
    %254 = vector.load %arg7[%c0_91, %c0_92] : memref<4x4xf32, #tpu.memory_space<vmem>>, vector<4x4xf32>
    %cst_93 = arith.constant dense<0.000000e+00> : vector<4x256xf32>
    %255 = tpu.matmul %254, %253, %cst_93 {dimension_numbers = #tpu.dot_dimension_numbers<[1], [0], [0], [1], [0, 0, 1, 1], [], []>} : vector<4x4xf32>, vector<4x256xf32>, vector<4x256xf32> -> vector<4x256xf32>
    %c0_94 = arith.constant 0 : index
    %c0_95 = arith.constant 0 : index
    %256 = vector.load %arg8[%c0_94, %c0_95] : memref<4x1xf32, #tpu.memory_space<vmem>>, vector<4x1xf32>
    %257 = vector.broadcast %256 : vector<4x1xf32> to vector<4x256xf32>
    %258 = arith.addf %255, %257 : vector<4x256xf32>
    %cst_96 = arith.constant 0.000000e+00 : f32
    %259 = vector.broadcast %cst_96 : f32 to vector<4x256xf32>
    %260 = arith.maximumf %258, %259 : vector<4x256xf32>
    %261 = tpu.concatenate %183, %252, %260, %1 in 0 : vector<4x256xf32>, vector<4x256xf32>, vector<4x256xf32>, vector<4x256xf32> -> vector<16x256xf32>
    %c0_97 = arith.constant 0 : index
    %c0_98 = arith.constant 0 : index
    %262 = vector.load %arg9[%c0_97, %c0_98] : memref<8x16xf32, #tpu.memory_space<vmem>>, vector<8x16xf32>
    %cst_99 = arith.constant dense<0.000000e+00> : vector<8x256xf32>
    %263 = tpu.matmul %262, %261, %cst_99 {dimension_numbers = #tpu.dot_dimension_numbers<[1], [0], [0], [1], [0, 0, 1, 1], [], []>} : vector<8x16xf32>, vector<16x256xf32>, vector<8x256xf32> -> vector<8x256xf32>
    %c0_100 = arith.constant 0 : index
    %c0_101 = arith.constant 0 : index
    %264 = vector.load %arg10[%c0_100, %c0_101] : memref<8x1xf32, #tpu.memory_space<vmem>>, vector<8x1xf32>
    %265 = vector.broadcast %264 : vector<8x1xf32> to vector<8x256xf32>
    %266 = arith.addf %263, %265 : vector<8x256xf32>
    %cst_102 = arith.constant 0.000000e+00 : f32
    %267 = vector.broadcast %cst_102 : f32 to vector<8x256xf32>
    %268 = arith.maximumf %266, %267 : vector<8x256xf32>
    %c0_103 = arith.constant 0 : index
    %c0_104 = arith.constant 0 : index
    %c0_105 = arith.constant 0 : index
    %269 = vector.load %arg11[%c0_103, %c0_104, %c0_105] : memref<1x8x256xf32, #tpu.memory_space<vmem>>, vector<1x8x256xf32>
    %270 = vector.shape_cast %269 : vector<1x8x256xf32> to vector<8x256xf32>
    %271 = vector.shape_cast %268 : vector<8x256xf32> to vector<1x8x256xf32>
    tpu.vector_store %arg11[%c0_103, %c0_104, %c0_105], %271 {strides = array<i32>} : memref<1x8x256xf32, #tpu.memory_space<vmem>>, vector<1x8x256xf32>,
    return
  }
  func.func @transform_0(%arg0: i32) -> (i32, i32, i32) {
    %c0_i32 = arith.constant 0 : i32
    %c0_i32_0 = arith.constant 0 : i32
    %c0_i32_1 = arith.constant 0 : i32
    return %arg0, %c0_i32, %c0_i32_0 : i32, i32, i32
  }
  func.func @transform_1(%arg0: i32) -> (i32, i32, i32) {
    %c0_i32 = arith.constant 0 : i32
    %c0_i32_0 = arith.constant 0 : i32
    %c0_i32_1 = arith.constant 0 : i32
    %c0_i32_2 = arith.constant 0 : i32
    return %c0_i32, %c0_i32_0, %c0_i32_1 : i32, i32, i32
  }
  func.func @transform_2(%arg0: i32) -> (i32, i32) {
    %c0_i32 = arith.constant 0 : i32
    %c0_i32_0 = arith.constant 0 : i32
    %c0_i32_1 = arith.constant 0 : i32
    return %c0_i32, %c0_i32_0 : i32, i32
  }
  func.func @transform_3(%arg0: i32) -> (i32, i32) {
    %c0_i32 = arith.constant 0 : i32
    %c0_i32_0 = arith.constant 0 : i32
    %c0_i32_1 = arith.constant 0 : i32
    return %c0_i32, %c0_i32_0 : i32, i32
  }
  func.func @transform_4(%arg0: i32) -> (i32, i32) {
    %c0_i32 = arith.constant 0 : i32
    %c0_i32_0 = arith.constant 0 : i32
    %c0_i32_1 = arith.constant 0 : i32
    return %c0_i32, %c0_i32_0 : i32, i32
  }
  func.func @transform_5(%arg0: i32) -> (i32, i32) {
    %c0_i32 = arith.constant 0 : i32
    %c0_i32_0 = arith.constant 0 : i32
    %c0_i32_1 = arith.constant 0 : i32
    return %c0_i32, %c0_i32_0 : i32, i32
  }
  func.func @transform_6(%arg0: i32) -> (i32, i32) {
    %c0_i32 = arith.constant 0 : i32
    %c0_i32_0 = arith.constant 0 : i32
    %c0_i32_1 = arith.constant 0 : i32
    return %c0_i32, %c0_i32_0 : i32, i32
  }
  func.func @transform_7(%arg0: i32) -> (i32, i32) {
    %c0_i32 = arith.constant 0 : i32
    %c0_i32_0 = arith.constant 0 : i32
    %c0_i32_1 = arith.constant 0 : i32
    return %c0_i32, %c0_i32_0 : i32, i32
  }
  func.func @transform_8(%arg0: i32) -> (i32, i32) {
    %c0_i32 = arith.constant 0 : i32
    %c0_i32_0 = arith.constant 0 : i32
    %c0_i32_1 = arith.constant 0 : i32
    return %c0_i32, %c0_i32_0 : i32, i32
  }
  func.func @transform_9(%arg0: i32) -> (i32, i32) {
    %c0_i32 = arith.constant 0 : i32
    %c0_i32_0 = arith.constant 0 : i32
    %c0_i32_1 = arith.constant 0 : i32
    return %c0_i32, %c0_i32_0 : i32, i32
  }
  func.func @transform_10(%arg0: i32) -> (i32, i32, i32) {
    %c0_i32 = arith.constant 0 : i32
    %c0_i32_0 = arith.constant 0 : i32
    %c0_i32_1 = arith.constant 0 : i32
    return %arg0, %c0_i32, %c0_i32_0 : i32, i32, i32
  }
}

</mosaic_0001>

<bundles_post_ra>
// kernel: tpu_custom_call.1
= control target key start
LH: loop header
LB: loop body
LE: loop exit
PB: predicated region body
PF: predicated region fallthrough
CT: control target
= control target key end

     0   :  { %15 = vsyncpa [#allocation3], 0  ;;  %s2501_s0 = inlined_call_operand.vmem [shape: f32[2,4,256], index: 0, kind: input, shape index: {}]   ;;  %s2502_s1 = inlined_call_operand.hbm [shape: f32[25,1,256], index: 1, kind: input, shape index: {}]   ;;  %s2503_s2 = inlined_call_operand.vmem [shape: f32[4,100], index: 2, kind: input, shape index: {}]   ;;  %s2504_s3 = inlined_call_operand.vmem [shape: f32[4,1], index: 3, kind: input, shape index: {}]   ;;  %s2505_s4 = inlined_call_operand.vmem [shape: f32[4,36], index: 4, kind: input, shape index: {}]   ;;  %s2506_s5 = inlined_call_operand.vmem [shape: f32[4,1], index: 5, kind: input, shape index: {}]   ;;  %s2507_s6 = inlined_call_operand.vmem [shape: f32[4,4], index: 6, kind: input, shape index: {}]   ;;  %s2508_s7 = inlined_call_operand.vmem [shape: f32[4,1], index: 7, kind: input, shape index: {}]   ;;  %s2509_s8 = inlined_call_operand.vmem [shape: f32[8,16], index: 8, kind: input, shape index: {}]   ;;  %s2510_s9 = inlined_call_operand.vmem [shape: f32[8,1], index: 9, kind: input, shape index: {}]   ;;  %s2511_s10 = inlined_call_operand.hbm [shape: f32[2,8,256], index: 10, kind: output, shape index: {}]  }
   0x1   :  { %16 = vsyncpa [#allocation4], 0 }
   0x2   :  { %18 = vsyncpa [#allocation4 + $0x1], 0  ;;  %s1999_s13 = smov 0   ;;  %s2001_s14 = smov 0  }
   0x3   :  { %s2003_s15 = smov 0   ;;  %s2005_s16 = smov 0  }
   0x4 LB: > { %s2020_s17 = sadd.s32 4294967295, %s1912_s16   ;;  %s1673_s18 = sadd.s32 4294967294, %s1912_s16   ;;  %s1912_s16 = sphi %s2005_s16, %s2533_s16   ;;  %s1908_s15 = sphi %s2003_s15, %s2532_s15   ;;  %s1904_s14 = sphi %s2001_s14, %s2531_s14   ;;  %s1900_s13 = sphi %s1999_s13, %s2530_s13  }
   0x5   : > { %s2024_s19 = sadd.s32 1, %s1912_s16   ;;  %s246_s20 = sadd.s32 1, %s1908_s15 }
   0x6   : > { %s243_s21 = ssub.s32 %s1912_s16, %s2024_s19  ;;  %p256_p0 = scmp.ne.s32.totalorder %s1908_s15, %s1904_s14 }
   0x7   : > { %p244_p1 = scmp.eq.s32.totalorder %s243_s21, 0  ;;  %p257_p2 = scmp.eq.s32.totalorder %s2020_s17, 1 }
   0x8   : > { %p262_p3 = scmp.ne.s32.totalorder %s1904_s14, %s1900_s13  ;;  %p263_p4 = scmp.eq.s32.totalorder %s1673_s18, 1 }
   0x9   : > { %s2035_s22 = scalar_select %p244_p1, %s1908_s15, %s246_s20  }
   0xa   : > { %p2037_p5 = por %p257_p2, %p256_p0  ;;  %p2041_p6 = por %p263_p4, %p262_p3 }
   0xb   : > { %p1674_p7 = scmp.ge.s32.totalorder %s1912_s16, 1  ;;  %p270_p8 = scmp.lt.s32.totalorder %s1912_s16, 3 }
   0xc   : > { %s2519_s23 = scalar_select %p2037_p5, 1, 0 }
   0xd   : > { %s2520_s24 = scalar_select %p2041_p6, 1, 0 }
   0xe   : > { %p2512_p9 = scmp.eq.s32.totalorder %s2020_s17, 0  ;;  %p2048_p10 = pnand %p1674_p7, %p270_p8 }
   0xf   : > { %s1914_s26 = smov [#allocation2]   ;;  %s1818_s11 = scalar_lea.hbm %s2502_s1, 800 }
  0x10   : > { %s2521_s25 = scalar_select %p2048_p10, 1, 0 }
  0x11   : > { %s282_s27 = sshll.u32 %s1914_s26, 4  ;;  %p1741_p11 = pneg %p2048_p10  ;;  %s283_s27 = int_to_ptr.vmem [resolvable:$true] %s282_s27 }
  0x12   : > { %p1819_p13 = scmp.ne.s32.totalorder %s2502_s1, %s1818_s11  ;;  %p1825_p3 = scmp.lt.u32.totalorder %s1818_s11, %s2502_s1 }
  0x13   : > { %p2056_p12 = pnand %p2512_p9, %p1741_p11 }
  0x15   : > { %p1820_p0 = pneg %p2056_p12 }
  0x17   : > { %p1821_p1 = pnand %p1820_p0, %p1819_p13 }
  0x19   : > { %p1822_p2 = pneg %p1821_p1 }
  0x1b   : > { %p1827_p4 = pnand %p1825_p3, %p1822_p2 }
  0x1d   : > { %1830 = shalt.err (!%p1827_p4)
}
  0x1e   : > { %s1831_s26 = scalar_lea.vmem %s283_s27, 800  ;;  %p1839_p9 = scmp.lt.s32.totalorder %s283_s27, %s283_s27 }
  0x1f   : > { %p1832_p7 = scmp.ne.s32.totalorder %s283_s27, %s1831_s26  ;;  %p1840_p6 = scmp.lt.s32.totalorder %s1831_s26, %s1831_s26 }
  0x21   : > { %p1834_p8 = pnand %p1832_p7, %p1820_p0  ;;  %p1841_p5 = por %p1840_p6, %p1839_p9 }
  0x23   : > { %p1835_p11 = pneg %p1834_p8 }
  0x25   : > { %p1842_p10 = pnand %p1841_p5, %p1835_p11 }
  0x27   : > { %1845 = shalt.err (!%p1842_p10)
}
  0x28   : > { %s1915_s29 = smov 32   ;;  %s1916_s30 = smov 2  }
  0x29   : > { %1744 = dma.hbm_to_vmem [thread:$0]  (!%p2056_p12), %s2502_s1, 800, %s283_s27, [#allocation3], %s1915_s29, %s1915_s29, %s1916_s30  }
  0x2a   : > { %p2523_p13 = scmp.ne.s32.totalorder %s2521_s25, 0 }
  0x2b   : > { %p2524_p1 = scmp.eq.s32.totalorder (!%p2523_p13), %s2020_s17, 0 }
  0x2c   : > { %330 = sbr.rel (%p2523_p13) target bundleno = 1323 (0x52b), region = 60 }
  0x33   : > { %1891 = dma.done.wait (%p2524_p1), [#allocation3], 800   ;;  %p2525_p0 = pmov %p2524_p1 }
  0x34   : > { %p368_p5 = scmp.lt.s32.totalorder %s2020_s17, 1  ;;  %s1917_s25 = smov 31   ;;  %v1939_v2 = vmov 0.0   ;;  %v1941_v3 = vmov 0   ;;  %v1092_v4 = vld [vmem:[%s2504_s3] sm:$0xf]  ;;  %v388_v5 = vlaneseq }
  0x35   : > { %1893 = vsyncadd (%p2525_p0), [#allocation3], 4294966496  ;;  %s1918_s27 = smov 33   ;;  %s1919_s29 = smov 34   ;;  %1172 = vmatprep.mubr.f32.mxu0 %v1939_v2  ;;  %1389 = vmatprep.mubr.f32.mxu1 %v1939_v2  ;;  %v411_v11 = vld [vmem:[#allocation2 + $0x2] sm:$0x3] }
  0x36   : > { %s369_s11 = scalar_select %p368_p5, %s2020_s17, 1  ;;  %1813 = vset.pattern.permute.xlu0 %v1941_v3  ;;  %1814 = vset.pattern.permute.xlu1 %v1941_v3  ;;  %v389_v6 = vshrl.u32 %v388_v5, 7  ;;  %vm405_vm0 = vcmask 269312   ;;  %v461_v12 = vld [vmem:[#allocation2 + $0x6] sm:$0x3]  ;;  %vm455_vm1 = vcmask 252928  }
  0x37   : > { %s1920_s30 = smov 32   ;;  %s1921_s12 = smov 18   ;;  %v386_v19 = vld [vmem:[#allocation2] sm:$0x3]  ;;  %vm381_vm2 = vcmask 277504   ;;  %vm430_vm3 = vcmask 261120  }
  0x38   : > { %s1697_s20 = sshll.u32 %s369_s11, 3  ;;  %s1922_s18 = smov 16   ;;  %v2165_v9 = vsub.s32 0, %v389_v6  ;;  %v2167_v10 = vsub.s32 1, %v389_v6  ;;  %v436_v22 = vld [vmem:[#allocation2 + $0x4] sm:$0x3] }
  0x39   : > { %s2087_s26 = scalar_lea.vmem %s2501_s0, %s1697_s20  ;;  %s1923_s11 = smov 30   ;;  %vm1042_vm4 = vcmask 1043456   ;;  %v511_v57 = vld [vmem:[#allocation2 + $0xa] sm:$0x3]  ;;  %v561_v58 = vld [vmem:[#allocation2 + $0xe] sm:$0x3] }
  0x3a   : > { %v2090_v0 = vld [vmem:[%s2087_s26] sm:$0xff]  ;;  %s1924_s20 = smov 17   ;;  %s1925_s21 = smov 14   ;;  %v416_v14 = vrot.slane %v411_v11, %v2165_v9  ;;  %v420_v15 = vrot.slane %v411_v11, %v2167_v10  ;;  %v466_v20 = vrot.slane %v461_v12, %v2165_v9  ;;  %v470_v21 = vrot.slane %v461_v12, %v2167_v10  ;;  %v486_v3 = vld [vmem:[#allocation2 + $0x8] sm:$0x3] }
  0x3b   : > { %453 = vrot.lane.b32.xlu1 %v2090_v0, %s1917_s25  ;;  %403 = vrot.lane.b32.xlu0 %v2090_v0, %s1918_s27  ;;  %v2096_v1 = vcombine.high %v2090_v0, %v2090_v0  ;;  %s1926_s28 = smov 1   ;;  %v391_v26 = vrot.slane %v386_v19, %v2165_v9  ;;  %v395_v27 = vrot.slane %v386_v19, %v2167_v10  ;;  %vm505_vm5 = vcmask 146432   ;;  %v536_v11 = vld [vmem:[#allocation2 + $0xc] sm:$0x3]  ;;  %p2528_p9 = scmp.ne.s32.totalorder %s2519_s23, 0 }
  0x3c   : > { %v441_v35 = vrot.slane %v436_v22, %v2165_v9  ;;  %v445_v36 = vrot.slane %v436_v22, %v2167_v10  ;;  %vm555_vm6 = vcmask 130048   ;;  %v516_v61 = vrot.slane %v511_v57, %v2165_v9 }
  0x3d   : > { %v520_v62 = vrot.slane %v511_v57, %v2167_v10  ;;  %v2186_v63 = vrot.slane %v561_v58, %v2165_v9  ;;  %v2189_v6 = vrot.slane %v561_v58, %v2167_v10  ;;  %vm480_vm7 = vcmask 244736   ;;  %v636_v57 = vld [vmem:[#allocation2 + $0x14] sm:$0x3] }
  0x3e   : > { %vm530_vm8 = vcmask 138240   ;;  %v2198_v22 = vrot.slane %v536_v11, %v2165_v9  ;;  %vm605_vm9 = vcmask 113664   ;;  %vm655_vm10 = vcmask 7168  }
  0x3f   : > { %379 = vrot.lane.b32.xlu1 %v2090_v0, %s1919_s29  ;;  %400 = vrot.lane.b32.xlu0 %v2096_v1, %s1918_s27  ;;  %s1928_s27 = smov 2   ;;  %vm580_vm11 = vcmask 121856   ;;  %vm630_vm12 = vcmask 15360   ;;  %vm695_vm13 = vcmask 1039360   ;;  %vm745_vm14 = vcmask 932864  }
  0x40   : > { %vm720_vm15 = vcmask 1031168  }
  0x43   : > { %450 = vrot.lane.b32.xlu1 %v2096_v1, %s1917_s25  ;;  %376 = vrot.lane.b32.xlu0 %v2096_v1, %s1919_s29  ;;  %s2515_s25 = smov 15   ;;  %s1929_s29 = smov 127  }
  0x47   : > { %428 = vrot.lane.b32.xlu1 %v2090_v0, %s1920_s30  ;;  %425 = vrot.lane.b32.xlu0 %v2096_v1, %s1920_s30  ;;  %s1930_s30 = smov 114  }
  0x4b   : > { %503 = vrot.lane.b32.xlu1 %v2090_v0, %s1921_s12  ;;  %500 = vrot.lane.b32.xlu0 %v2096_v1, %s1921_s12  ;;  %s1931_s12 = smov 126  }
  0x4f   : > { %553 = vrot.lane.b32.xlu1 %v2090_v0, %s1922_s18  ;;  %550 = vrot.lane.b32.xlu0 %v2096_v1, %s1922_s18 }
  0x53   : > { %478 = vrot.lane.b32.xlu1 %v2090_v0, %s1923_s11  ;;  %475 = vrot.lane.b32.xlu0 %v2096_v1, %s1923_s11  ;;  %s1932_s11 = smov 112  }
  0x57   : > { %528 = vrot.lane.b32.xlu1 %v2090_v0, %s1924_s20  ;;  %525 = vrot.lane.b32.xlu0 %v2096_v1, %s1924_s20 }
  0x5b   : > { %603 = vrot.lane.b32.xlu1 %v2090_v0, %s1925_s21  ;;  %600 = vrot.lane.b32.xlu0 %v2096_v1, %s1925_s21  ;;  %s1933_s21 = smov 110  }
  0x5f   : > { %653 = vrot.lane.b32.xlu1 %v2090_v0, %s1926_s28  ;;  %650 = vrot.lane.b32.xlu0 %v2096_v1, %s1926_s28 }
  0x63   : > { %578 = vrot.lane.b32.xlu1 %v2090_v0, %s2515_s25  ;;  %575 = vrot.lane.b32.xlu0 %v2096_v1, %s2515_s25  ;;  %s1938_s25 = smov 98  }
  0x67   : > { %628 = vrot.lane.b32.xlu1 %v2090_v0, %s1928_s27  ;;  %625 = vrot.lane.b32.xlu0 %v2096_v1, %s1928_s27  ;;  %s1934_s27 = smov 113  }
  0x6b   : > { %693 = vrot.lane.b32.xlu1 %v2096_v1, %s1929_s29  ;;  %691 = vrot.lane.b32.xlu0 %v2090_v0, %s1929_s29 }
  0x6f   : > { %743 = vrot.lane.b32.xlu1 %v2096_v1, %s1930_s30  ;;  %741 = vrot.lane.b32.xlu0 %v2090_v0, %s1930_s30  ;;  %s2517_s30 = smov 111  }
  0x73   : > { %718 = vrot.lane.b32.xlu1 %v2096_v1, %s1931_s12  ;;  %716 = vrot.lane.b32.xlu0 %v2090_v0, %s1931_s12  ;;  %s1936_s12 = smov 97  }
  0x77   : > { %793 = vrot.lane.b32.xlu1 %v2096_v1, %s1932_s11  ;;  %791 = vrot.lane.b32.xlu0 %v2090_v0, %s1932_s11 }
  0x7b   : > { %843 = vrot.lane.b32.xlu1 %v2096_v1, %s1933_s21  ;;  %841 = vrot.lane.b32.xlu0 %v2090_v0, %s1933_s21  ;;  %s1937_s21 = smov 95  }
  0x7f   : > { %768 = vrot.lane.b32.xlu1 %v2096_v1, %s1934_s27  ;;  %766 = vrot.lane.b32.xlu0 %v2090_v0, %s1934_s27 }
  0x83   : > { %818 = vrot.lane.b32.xlu1 %v2096_v1, %s2517_s30  ;;  %816 = vrot.lane.b32.xlu0 %v2090_v0, %s2517_s30  ;;  %s1940_s30 = smov 96  }
  0x87   : > { %893 = vrot.lane.b32.xlu1 %v2096_v1, %s1936_s12  ;;  %891 = vrot.lane.b32.xlu0 %v2090_v0, %s1936_s12  ;;  %s1942_s12 = smov 94  }
  0x8b   : > { %943 = vrot.lane.b32.xlu1 %v2096_v1, %s1937_s21  ;;  %941 = vrot.lane.b32.xlu0 %v2090_v0, %s1937_s21  ;;  %s2526_s21 = smov 15  }
  0x8f   : > { %868 = vrot.lane.b32.xlu1 %v2096_v1, %s1938_s25  ;;  %866 = vrot.lane.b32.xlu0 %v2090_v0, %s1938_s25  ;;  %s365_s25 = sand.u32 1, %s1904_s14  }
  0x93   : > { %918 = vrot.lane.b32.xlu1 %v2096_v1, %s1940_s30  ;;  %916 = vrot.lane.b32.xlu0 %v2090_v0, %s1940_s30  ;;  %s1698_s30 = sshll.u32 %s2020_s17, 8  ;;  %s1943_s17 = smov [#allocation5]  }
  0x97   : > { %968 = vrot.lane.b32.xlu1 %v2096_v1, %s1942_s12  ;;  %966 = vrot.lane.b32.xlu0 %v2090_v0, %s1942_s12 }
  0x9b   : > { %1095 = vperm.xlu0 %1813, %v1092_v4  }
  0xad   : > { %v454_v7 = vpop.permute.xlu1 %453  ;;  %v404_v8 = vpop.permute.xlu0 %403 }
  0xb1   : > { %v380_v13 = vpop.permute.xlu1 %379  ;;  %v401_v16 = vpop.permute.xlu0 %400 }
  0xb2   : > { %v406_v17 = vsel %vm405_vm0, %v404_v8, %v401_v16  ;;  %v409_v18 = vsel %vm405_vm0, %v401_v16, %v404_v8  ;;  %vm795_vm0 = vcmask 916480  }
  0xb3   : > { %v423_v23 = vmul.f32 %v416_v14, %v409_v18  ;;  %v424_v24 = vmul.f32 %v420_v15, %v406_v17  ;;  %v495_v14 = vrot.slane %v486_v3, %v2167_v10 }
  0xb5   : > { %v451_v25 = vpop.permute.xlu1 %450  ;;  %v377_v28 = vpop.permute.xlu0 %376  ;;  %v993_v41 = vrot.slane %v423_v23, 4  ;;  %v994_v42 = vrot.slane %v424_v24, 4  ;;  %v2201_v23 = vrot.slane %v536_v11, %v2167_v10 }
  0xb6   : > { %v456_v29 = vsel %vm455_vm1, %v454_v7, %v451_v25  ;;  %v459_v30 = vsel %vm455_vm1, %v451_v25, %v454_v7  ;;  %v382_v31 = vsel %vm381_vm2, %v380_v13, %v377_v28  ;;  %v385_v32 = vsel %vm381_vm2, %v377_v28, %v380_v13 }
  0xb7   : > { %v473_v33 = vmul.f32 %v466_v20, %v459_v30  ;;  %v474_v34 = vmul.f32 %v470_v21, %v456_v29  ;;  %v398_v37 = vmul.f32 %v391_v26, %v385_v32  ;;  %v399_v38 = vmul.f32 %v395_v27, %v382_v31 }
  0xb8   : > { %v491_v13 = vrot.slane %v486_v3, %v2165_v9  ;;  %vm845_vm1 = vcmask 900096   ;;  %vm770_vm2 = vcmask 924672  }
  0xb9   : > { %v429_v39 = vpop.permute.xlu1 %428  ;;  %v426_v40 = vpop.permute.xlu0 %425  ;;  %v999_v45 = vrot.slane %v473_v33, 4  ;;  %v1000_v46 = vrot.slane %v474_v34, 4  ;;  %v1044_v51 = vsel %vm1042_vm4, %v399_v38, %v994_v42  ;;  %v1043_v53 = vsel %vm1042_vm4, %v398_v37, %v993_v41 }
  0xba   : > { %v431_v43 = vsel %vm430_vm3, %v429_v39, %v426_v40  ;;  %v434_v44 = vsel %vm430_vm3, %v426_v40, %v429_v39  ;;  %vm820_vm3 = vcmask 908288  }
  0xbb   : > { %v448_v47 = vmul.f32 %v441_v35, %v434_v44  ;;  %v449_v48 = vmul.f32 %v445_v36, %v431_v43  ;;  %v611_v44 = vld [vmem:[#allocation2 + $0x12] sm:$0x3] }
  0xbd   : > { %v504_v49 = vpop.permute.xlu1 %503  ;;  %v501_v50 = vpop.permute.xlu0 %500  ;;  %v1046_v52 = vsel %vm1042_vm4, %v449_v48, %v1000_v46  ;;  %v1045_v54 = vsel %vm1042_vm4, %v448_v47, %v999_v45  ;;  %v661_v45 = vld [vmem:[#allocation2 + $0x16] sm:$0x3]  ;;  %v616_v48 = vrot.slane %v611_v44, %v2165_v9 }
  0xbe   : > { %v1699_v55 = vpack.c.bf16 %v1046_v52, %v1044_v51  ;;  %v1701_v56 = vpack.c.bf16 %v1045_v54, %v1043_v53  ;;  %v506_v4 = vsel %vm505_vm5, %v504_v49, %v501_v50  ;;  %v509_v5 = vsel %vm505_vm5, %v501_v50, %v504_v49  ;;  %v586_v51 = vld [vmem:[#allocation2 + $0x10] sm:$0x3] }
  0xbf   : > { %v523_v16 = vmul.f32 %v516_v61, %v509_v5  ;;  %v524_v17 = vmul.f32 %v520_v62, %v506_v4  ;;  %v620_v49 = vrot.slane %v611_v44, %v2167_v10  ;;  %v2214_v50 = vrot.slane %v661_v45, %v2165_v9  ;;  %v676_v62 = vld [vmem:[#allocation2 + $0x18] sm:$0x3] }
  0xc0   : > { %1700 = vmatprep.subr.bf16.mxu0 %v1699_v55  ;;  %v2217_v54 = vrot.slane %v661_v45, %v2167_v10  ;;  %vm895_vm5 = vcmask 793600  }
  0xc1   : > { %v554_v59 = vpop.permute.xlu1 %553  ;;  %1702 = vmatpush1.bf16.msra.mxu0 %v1701_v56  ;;  %v551_v60 = vpop.permute.xlu0 %550  ;;  %v1005_v28 = vrot.slane %v523_v16, 4  ;;  %v1006_v29 = vrot.slane %v524_v17, 4 }
  0xc2   : > { %v556_v7 = vsel %vm555_vm6, %v554_v59, %v551_v60  ;;  %v559_v8 = vsel %vm555_vm6, %v551_v60, %v554_v59  ;;  %v2222_v59 = vrot.slane %v586_v51, %v2165_v9  ;;  %v2225_v60 = vrot.slane %v586_v51, %v2167_v10 }
  0xc3   : > { %v573_v20 = vmul.f32 %v2186_v63, %v559_v8  ;;  %v574_v21 = vmul.f32 %v2189_v6, %v556_v7 }
  0xc5   : > { %v479_v12 = vpop.permute.xlu1 %478  ;;  %v476_v15 = vpop.permute.xlu0 %475  ;;  %v1011_v32 = vrot.slane %v573_v20, 4  ;;  %v1012_v33 = vrot.slane %v574_v21, 4  ;;  %v702_v20 = vld [vmem:[#allocation2 + $0x1a] sm:$0x3] }
  0xc6   : > { %v481_v18 = vsel %vm480_vm7, %v479_v12, %v476_v15  ;;  %v484_v19 = vsel %vm480_vm7, %v476_v15, %v479_v12  ;;  %v641_v12 = vrot.slane %v636_v57, %v2165_v9  ;;  %v2237_v15 = vrot.slane %v676_v62, %v2167_v10 }
  0xc7   : > { %v498_v24 = vmul.f32 %v491_v13, %v484_v19  ;;  %v499_v25 = vmul.f32 %v495_v14, %v481_v18  ;;  %v645_v13 = vrot.slane %v636_v57, %v2167_v10  ;;  %v2234_v14 = vrot.slane %v676_v62, %v2165_v9 }
  0xc8   : > { %vm945_vm7 = vcmask 777216  }
  0xc9   : > { %v529_v26 = vpop.permute.xlu1 %528  ;;  %v526_v27 = vpop.permute.xlu0 %525  ;;  %v1048_v38 = vsel %vm1042_vm4, %v499_v25, %v1006_v29  ;;  %v1047_v40 = vsel %vm1042_vm4, %v498_v24, %v1005_v28 }
  0xca   : > { %v531_v30 = vsel %vm530_vm8, %v529_v26, %v526_v27  ;;  %v534_v31 = vsel %vm530_vm8, %v526_v27, %v529_v26 }
  0xcb   : > { %v548_v34 = vmul.f32 %v2198_v22, %v534_v31  ;;  %v549_v35 = vmul.f32 %v2201_v23, %v531_v30  ;;  %v2244_v31 = vrot.slane %v702_v20, %v2165_v9 }
  0xcd   : > { %v604_v36 = vpop.permute.xlu1 %603  ;;  %v601_v37 = vpop.permute.xlu0 %600  ;;  %v1050_v39 = vsel %vm1042_vm4, %v549_v35, %v1012_v33  ;;  %v1049_v41 = vsel %vm1042_vm4, %v548_v34, %v1011_v32  ;;  %v2247_v32 = vrot.slane %v702_v20, %v2167_v10  ;;  %v752_v33 = vld [vmem:[#allocation2 + $0x1e] sm:$0x3]  ;;  %v688_v34 = vcombine.low %v2234_v14, %v2237_v15 }
  0xce   : > { %v1703_v42 = vpack.c.bf16 %v1050_v39, %v1048_v38  ;;  %v1705_v43 = vpack.c.bf16 %v1049_v41, %v1047_v40  ;;  %v606_v52 = vsel %vm605_vm9, %v604_v36, %v601_v37  ;;  %v609_v53 = vsel %vm605_vm9, %v601_v37, %v604_v36 }
  0xcf   : > { %v623_v3 = vmul.f32 %v616_v48, %v609_v53  ;;  %v624_v4 = vmul.f32 %v620_v49, %v606_v52  ;;  %v757_v45 = vrot.slane %v752_v33, %v2165_v9  ;;  %v690_v53 = vmul.f32 %v688_v34, %v2090_v0 }
  0xd0   : > { %1704 = vmatprep.subr.bf16.mxu0 %v1703_v42  ;;  %vm870_vm9 = vcmask 801792  }
  0xd1   : > { %v654_v46 = vpop.permute.xlu1 %653  ;;  %1706 = vmatpush1.bf16.msra.mxu0 %v1705_v43  ;;  %v651_v47 = vpop.permute.xlu0 %650  ;;  %v1017_v21 = vrot.slane %v623_v3, 4  ;;  %v1018_v24 = vrot.slane %v624_v4, 4 }
  0xd2   : > { %v656_v55 = vsel %vm655_vm10, %v654_v46, %v651_v47  ;;  %v659_v56 = vsel %vm655_vm10, %v651_v47, %v654_v46  ;;  %v761_v46 = vrot.slane %v752_v33, %v2167_v10  ;;  %v727_v47 = vld [vmem:[#allocation2 + $0x1c] sm:$0x3] }
  0xd3   : > { %v673_v8 = vmul.f32 %v2214_v50, %v659_v56  ;;  %v674_v11 = vmul.f32 %v2217_v54, %v656_v55  ;;  %v736_v62 = vrot.slane %v727_v47, %v2167_v10 }
  0xd5   : > { %v579_v58 = vpop.permute.xlu1 %578  ;;  %v576_v61 = vpop.permute.xlu0 %575  ;;  %v1023_v27 = vrot.slane %v673_v8, 4  ;;  %v1024_v28 = vrot.slane %v674_v11, 4  ;;  %v1028_v8 = vcombine.high %v690_v53, %v690_v53 }
  0xd6   : > { %v581_v5 = vsel %vm580_vm11, %v579_v58, %v576_v61  ;;  %v584_v7 = vsel %vm580_vm11, %v576_v61, %v579_v58  ;;  %v732_v61 = vrot.slane %v727_v47, %v2165_v9 }
  0xd7   : > { %v598_v16 = vmul.f32 %v2222_v59, %v584_v7  ;;  %v599_v17 = vmul.f32 %v2225_v60, %v581_v5 }
  0xd9   : > { %v629_v18 = vpop.permute.xlu1 %628  ;;  %v626_v19 = vpop.permute.xlu0 %625  ;;  %v1052_v37 = vsel %vm1042_vm4, %v599_v17, %v1018_v24  ;;  %v1051_v39 = vsel %vm1042_vm4, %v598_v16, %v1017_v21 }
  0xda   : > { %v631_v25 = vsel %vm630_vm12, %v629_v18, %v626_v19  ;;  %v634_v26 = vsel %vm630_vm12, %v626_v19, %v629_v18  ;;  %vm920_vm12 = vcmask 785408  }
  0xdb   : > { %v648_v29 = vmul.f32 %v641_v12, %v634_v26  ;;  %v649_v30 = vmul.f32 %v645_v13, %v631_v25 }
  0xdd   : > { %v694_v35 = vpop.permute.xlu1 %693  ;;  %v692_v36 = vpop.permute.xlu0 %691  ;;  %v1054_v38 = vsel %vm1042_vm4, %v649_v30, %v1024_v28  ;;  %v1053_v40 = vsel %vm1042_vm4, %v648_v29, %v1023_v27  ;;  %v802_v29 = vld [vmem:[#allocation2 + $0x22] sm:$0x3]  ;;  %v852_v30 = vld [vmem:[#allocation2 + $0x26] sm:$0x3] }
  0xde   : > { %v696_v41 = vsel %vm695_vm13, %v692_v36, %v694_v35  ;;  %v700_v42 = vsel %vm695_vm13, %v694_v35, %v692_v36  ;;  %v1707_v43 = vpack.c.bf16 %v1054_v38, %v1052_v37  ;;  %v1709_v44 = vpack.c.bf16 %v1053_v40, %v1051_v39  ;;  %v777_v38 = vld [vmem:[#allocation2 + $0x20] sm:$0x3] }
  0xdf   : > { %v714_v48 = vmul.f32 %v2244_v31, %v696_v41  ;;  %v715_v49 = vmul.f32 %v2247_v32, %v700_v42  ;;  %v2269_v35 = vrot.slane %v802_v29, %v2165_v9  ;;  %v2272_v36 = vrot.slane %v802_v29, %v2167_v10  ;;  %v952_v29 = vld [vmem:[#allocation2 + $0x2e] sm:$0x3] }
  0xe0   : > { %1708 = vmatprep.subr.bf16.mxu0 %v1707_v43  ;;  %v857_v37 = vrot.slane %v852_v30, %v2165_v9  ;;  %v861_v41 = vrot.slane %v852_v30, %v2167_v10  ;;  %v2282_v47 = vrot.slane %v777_v38, %v2167_v10 }
  0xe1   : > { %v744_v51 = vpop.permute.xlu1 %743  ;;  %1710 = vmatpush1.bf16.msra.mxu0 %v1709_v44  ;;  %v742_v52 = vpop.permute.xlu0 %741  ;;  %v1032_v3 = vrot.slane %v714_v48, 4  ;;  %v1033_v4 = vrot.slane %v715_v49, 4  ;;  %v827_v44 = vld [vmem:[#allocation2 + $0x24] sm:$0x3] }
  0xe2   : > { %v746_v55 = vsel %vm745_vm14, %v742_v52, %v744_v51  ;;  %v750_v56 = vsel %vm745_vm14, %v744_v51, %v742_v52  ;;  %vm970_vm14 = vcmask 769024  }
  0xe3   : > { %v764_v57 = vmul.f32 %v757_v45, %v746_v55  ;;  %v765_v58 = vmul.f32 %v761_v46, %v750_v56  ;;  %v1056_v21 = vsel %vm1042_vm4, %v1028_v8, %v1033_v4  ;;  %v1055_v25 = vsel %vm1042_vm4, %v690_v53, %v1032_v3 }
  0xe4   : > { %v2279_v46 = vrot.slane %v777_v38, %v2165_v9  ;;  %v957_v38 = vrot.slane %v952_v29, %v2165_v9 }
  0xe5   : > { %v719_v5 = vpop.permute.xlu1 %718  ;;  %v717_v7 = vpop.permute.xlu0 %716  ;;  %v1038_v13 = vrot.slane %v764_v57, 4  ;;  %v1039_v16 = vrot.slane %v765_v58, 4  ;;  %v2289_v57 = vrot.slane %v827_v44, %v2165_v9  ;;  %v2292_v58 = vrot.slane %v827_v44, %v2167_v10 }
  0xe6   : > { %v721_v11 = vsel %vm720_vm15, %v717_v7, %v719_v5  ;;  %v725_v12 = vsel %vm720_vm15, %v719_v5, %v717_v7  ;;  %vm1098_vm15 = vcmask 818176  }
  0xe7   : > { %v739_v17 = vmul.f32 %v732_v61, %v721_v11  ;;  %v740_v18 = vmul.f32 %v736_v62, %v725_v12 }
  0xe9   : > { %v794_v19 = vpop.permute.xlu1 %793  ;;  %v792_v20 = vpop.permute.xlu0 %791  ;;  %v1058_v24 = vsel %vm1042_vm4, %v740_v18, %v1039_v16  ;;  %v1057_v26 = vsel %vm1042_vm4, %v739_v17, %v1038_v13 }
  0xea   : > { %v1711_v27 = vpack.c.bf16 %v1058_v24, %v1056_v21  ;;  %v1713_v28 = vpack.c.bf16 %v1057_v26, %v1055_v25  ;;  %v796_v39 = vsel %vm795_vm0, %v792_v20, %v794_v19  ;;  %v800_v40 = vsel %vm795_vm0, %v794_v19, %v792_v20 }
  0xeb   : > { %v814_v49 = vmul.f32 %v2269_v35, %v796_v39  ;;  %v815_v51 = vmul.f32 %v2272_v36, %v800_v40  ;;  %v877_v39 = vld [vmem:[#allocation2 + $0x28] sm:$0x3] }
  0xec   : > { %1712 = vmatprep.subr.bf16.mxu0 %v1711_v27 }
  0xed   : > { %v844_v33 = vpop.permute.xlu1 %843  ;;  %1714 = vmatpush1.bf16.msra.mxu0 %v1713_v28  ;;  %v842_v34 = vpop.permute.xlu0 %841  ;;  %v1061_v5 = vrot.slane %v814_v49, 4  ;;  %v1062_v7 = vrot.slane %v815_v51, 4  ;;  %v902_v28 = vld [vmem:[#allocation2 + $0x2a] sm:$0x3]  ;;  %v882_v49 = vrot.slane %v877_v39, %v2165_v9  ;;  %v886_v51 = vrot.slane %v877_v39, %v2167_v10 }
  0xee   : > { %v846_v42 = vsel %vm845_vm1, %v842_v34, %v844_v33  ;;  %v850_v43 = vsel %vm845_vm1, %v844_v33, %v842_v34  ;;  %v907_v34 = vrot.slane %v902_v28, %v2165_v9 }
  0xef   : > { %v864_v55 = vmul.f32 %v857_v37, %v846_v42  ;;  %v865_v56 = vmul.f32 %v861_v41, %v850_v43  ;;  %v911_v37 = vrot.slane %v902_v28, %v2167_v10  ;;  %v961_v42 = vrot.slane %v952_v29, %v2167_v10 }
  0xf1   : > { %v769_v45 = vpop.permute.xlu1 %768  ;;  %v767_v48 = vpop.permute.xlu0 %766  ;;  %v1067_v12 = vrot.slane %v864_v55, 4  ;;  %v1068_v13 = vrot.slane %v865_v56, 4 }
  0xf2   : > { %v771_v52 = vsel %vm770_vm2, %v767_v48, %v769_v45  ;;  %v775_v53 = vsel %vm770_vm2, %v769_v45, %v767_v48  ;;  %v927_v45 = vld [vmem:[#allocation2 + $0x2c] sm:$0x3] }
  0xf3   : > { %v789_v61 = vmul.f32 %v2279_v46, %v771_v52  ;;  %v790_v62 = vmul.f32 %v2282_v47, %v775_v53 }
  0xf5   : > { %v819_v3 = vpop.permute.xlu1 %818  ;;  %v817_v4 = vpop.permute.xlu0 %816  ;;  %v1084_v20 = vsel %vm1042_vm4, %v790_v62, %v1062_v7  ;;  %v1083_v24 = vsel %vm1042_vm4, %v789_v61, %v1061_v5  ;;  %v977_v62 = vld [vmem:[#allocation2 + $0x30] sm:$0x3]  ;;  %v932_v5 = vrot.slane %v927_v45, %v2165_v9  ;;  %v936_v7 = vrot.slane %v927_v45, %v2167_v10 }
  0xf6   : > { %v821_v8 = vsel %vm820_vm3, %v817_v4, %v819_v3  ;;  %v825_v11 = vsel %vm820_vm3, %v819_v3, %v817_v4 }
  0xf7   : > { %v839_v16 = vmul.f32 %v2289_v57, %v821_v8  ;;  %v840_v17 = vmul.f32 %v2292_v58, %v825_v11 }
  0xf9   : > { %v894_v18 = vpop.permute.xlu1 %893  ;;  %v892_v19 = vpop.permute.xlu0 %891  ;;  %v1086_v21 = vsel %vm1042_vm4, %v840_v17, %v1068_v13  ;;  %v1085_v25 = vsel %vm1042_vm4, %v839_v16, %v1067_v12  ;;  %v986_v16 = vrot.slane %v977_v62, %v2167_v10 }
  0xfa   : > { %v1715_v26 = vpack.c.bf16 %v1086_v21, %v1084_v20  ;;  %v1717_v27 = vpack.c.bf16 %v1085_v25, %v1083_v24  ;;  %v896_v40 = vsel %vm895_vm5, %v892_v19, %v894_v18  ;;  %v900_v41 = vsel %vm895_vm5, %v894_v18, %v892_v19 }
  0xfb   : > { %v914_v53 = vmul.f32 %v907_v34, %v896_v40  ;;  %v915_v55 = vmul.f32 %v911_v37, %v900_v41 }
  0xfc   : > { %1716 = vmatprep.subr.bf16.mxu0 %v1715_v26 }
  0xfd   : > { %v944_v30 = vpop.permute.xlu1 %943  ;;  %1718 = vmatpush1.bf16.msra.mxu0 %v1717_v27  ;;  %v942_v33 = vpop.permute.xlu0 %941  ;;  %v1073_v17 = vrot.slane %v914_v53, 4  ;;  %v1074_v18 = vrot.slane %v915_v55, 4  ;;  %v982_v27 = vrot.slane %v977_v62, %v2165_v9  ;;  %v1091_v9 = vld [vmem:[%s2503_s2] sm:$0xf] }
  0xfe   : > { %v946_v43 = vsel %vm945_vm7, %v942_v33, %v944_v30  ;;  %v950_v44 = vsel %vm945_vm7, %v944_v30, %v942_v33  ;;  %v1309_v55 = vld [vmem:[%s2506_s5] sm:$0xf] }
  0xff   : > { %v964_v3 = vmul.f32 %v957_v38, %v946_v43  ;;  %v965_v4 = vmul.f32 %v961_v42, %v950_v44 }
 0x101   : > { %v869_v48 = vpop.permute.xlu1 %868  ;;  %v867_v52 = vpop.permute.xlu0 %866  ;;  %v1079_v21 = vrot.slane %v964_v3, 4  ;;  %v1080_v24 = vrot.slane %v965_v4, 4 }
 0x102   : > { %v871_v56 = vsel %vm870_vm9, %v867_v52, %v869_v48  ;;  %v875_v61 = vsel %vm870_vm9, %v869_v48, %v867_v52 }
 0x103   : > { %v889_v8 = vmul.f32 %v882_v49, %v871_v56  ;;  %v890_v11 = vmul.f32 %v886_v51, %v875_v61  ;;  %v1503_v56 = vld [vmem:[%s2510_s9] sm:$0xff] }
 0x105   : > { %v919_v12 = vpop.permute.xlu1 %918  ;;  %v917_v13 = vpop.permute.xlu0 %916  ;;  %v1088_v29 = vsel %vm1042_vm4, %v890_v11, %v1074_v18  ;;  %v1087_v10 = vsel %vm1042_vm4, %v889_v8, %v1073_v17 }
 0x106   : > { %v921_v19 = vsel %vm920_vm12, %v917_v13, %v919_v12  ;;  %v925_v20 = vsel %vm920_vm12, %v919_v12, %v917_v13 }
 0x107   : > { %v939_v25 = vmul.f32 %v932_v5, %v921_v19  ;;  %v940_v26 = vmul.f32 %v936_v7, %v925_v20 }
 0x109   : > { %v969_v28 = vpop.permute.xlu1 %968  ;;  %v1090_v30 = vsel %vm1042_vm4, %v940_v26, %v1080_v24  ;;  %v967_v33 = vpop.permute.xlu0 %966  ;;  %v1089_v34 = vsel %vm1042_vm4, %v939_v25, %v1079_v21 }
 0x10a   : > { %v1719_v37 = vpack.c.bf16 %v1090_v30, %v1088_v29  ;;  %v971_v38 = vsel %vm970_vm14, %v967_v33, %v969_v28  ;;  %v975_v39 = vsel %vm970_vm14, %v969_v28, %v967_v33  ;;  %v1721_v40 = vpack.c.bf16 %v1089_v34, %v1087_v10 }
 0x10b   : > { %v990_v41 = vmul.f32 %v986_v16, %v975_v39  ;;  %v989_v42 = vmul.f32 %v982_v27, %v971_v38 }
 0x10c   : > { %1720 = vmatprep.subr.bf16.mxu0 %v1719_v37 }
 0x10d   : > { %1722 = vmatpush1.bf16.msra.mxu0 %v1721_v40 }
 0x10e   : > { %1682 = vmatprep.subr.msk.mxu0 %vm1042_vm4, %v990_v41 }
 0x111   : > { %1683 = vmatpush1.msk.msra.mxu0 %vm1042_vm4, %v989_v42 }
 0x112   : > { %1684 = vmatmul.mubr.msk.f32.vlgmr.msra.gmra.mrb[0].mxu0 %vm1098_vm15, %v1091_v9 }
 0x11a   : > { %v1096_v43 = vpop.permute.xlu0 %1095 }
 0x1e5   : > { %v1174_v44 = vpop.f32.mrb[0].mxu0 }
 0x1e6   : > { %v2327_v45 = vadd.f32 %v1174_v44, %v1096_v43  ;;  %v1176_v48 = vpop.f32.mrb[1].mxu0 }
 0x1e7   : > { %v2335_v52 = vadd.f32 %v1176_v48, %v1096_v43 }
 0x1e8   : > { %v1179_v49 = vmax.f32 %v2327_v45, 0.0 }
 0x1e9   : > { %v1180_v53 = vmax.f32 %v2335_v52, 0.0 }
 0x1ea   : > { %v2333_v51 = vadd.f32 %v1179_v49, %v2090_v0 }
 0x1eb   : > { %v2349_v0 = vadd.f32 %v1180_v53, %v2096_v1 }
 0x1ec   : > { %1232 = vrot.lane.b32.xlu0 %v2333_v51, %s1929_s29  ;;  %1200 = vrot.lane.b32.xlu1 %v2333_v51, %s1922_s18 }
 0x1f0   : > { %1254 = vrot.lane.b32.xlu0 %v2333_v51, %s1932_s11  ;;  %1222 = vrot.lane.b32.xlu1 %v2333_v51, %s1926_s28 }
 0x1f4   : > { %1219 = vrot.lane.b32.xlu0 %v2349_v0, %s1926_s28  ;;  %1189 = vrot.lane.b32.xlu1 %v2333_v51, %s1924_s20  ;;  %s2527_s28 = smov 111  }
 0x1f8   : > { %1185 = vrot.lane.b32.xlu0 %v2349_v0, %s1924_s20  ;;  %1211 = vrot.lane.b32.xlu1 %v2333_v51, %s2526_s21  ;;  %s1850_s20 = sshll.u32 %s1943_s17, 4  ;;  %s1851_s20 = int_to_ptr.vmem [resolvable:$false] %s1850_s20 }
 0x1fc   : > { %1208 = vrot.lane.b32.xlu0 %v2349_v0, %s2526_s21  ;;  %1197 = vrot.lane.b32.xlu1 %v2349_v0, %s1922_s18  ;;  %s1679_s18 = sshll.u32 %s365_s25, 4  ;;  %s2459_s21 = scalar_lea.hbm %s2511_s10, %s1698_s30 }
 0x200   : > { %1243 = vrot.lane.b32.xlu0 %v2333_v51, %s1934_s27  ;;  %1234 = vrot.lane.b32.xlu1 %v2349_v0, %s1929_s29  ;;  %s367_s29 = scalar_lea.vmem [#allocation5], %s1679_s18  ;;  %s1852_s18 = scalar_lea.vmem %s1851_s20, 512 }
 0x204   : > { %1265 = vrot.lane.b32.xlu0 %v2333_v51, %s2527_s28  ;;  %1256 = vrot.lane.b32.xlu1 %v2349_v0, %s1932_s11  ;;  %s1602_s11 = sshll.u32 %s367_s29, 4  ;;  %s2461_s11 = int_to_ptr.vmem [resolvable:$true] %s1602_s11 }
 0x205   : > { %p1853_p2 = scmp.lt.s32.totalorder %s2461_s11, %s1851_s20 }
 0x208   : > { %1312 = vperm.xlu0 %1813, %v1309_v55   ;;  %1245 = vrot.lane.b32.xlu1 %v2349_v0, %s1934_s27 }
 0x20c   : > { %1506 = vperm.xlu0 %1813, %v1503_v56   ;;  %1267 = vrot.lane.b32.xlu1 %v2349_v0, %s2527_s28  ;;  %s1588_s28 = scalar_lea.sflag [#allocation4], %s365_s25 }
 0x25e   : > { %v1233_v61 = vpop.permute.xlu0 %1232  ;;  %v1201_v62 = vpop.permute.xlu1 %1200 }
 0x262   : > { %v1255_v3 = vpop.permute.xlu0 %1254  ;;  %v1223_v4 = vpop.permute.xlu1 %1222 }
 0x266   : > { %v1220_v5 = vpop.permute.xlu0 %1219  ;;  %v1190_v7 = vpop.permute.xlu1 %1189 }
 0x267   : > { %v1224_v8 = vsel %vm655_vm10, %v1223_v4, %v1220_v5  ;;  %v1227_v11 = vsel %vm655_vm10, %v1220_v5, %v1223_v4  ;;  %vm1407_vm10 = vcmask 31744  }
 0x268   : > { %v1228_v16 = vmul.f32 %v1227_v11, %v2214_v50  ;;  %v1229_v17 = vmul.f32 %v1224_v8, %v2217_v54 }
 0x26a   : > { %v1186_v12 = vpop.permute.xlu0 %1185  ;;  %v1212_v13 = vpop.permute.xlu1 %1211  ;;  %v1284_v30 = vrot.slane %v1228_v16, 4  ;;  %v1285_v33 = vrot.slane %v1229_v17, 4 }
 0x26b   : > { %v1191_v18 = vsel %vm530_vm8, %v1190_v7, %v1186_v12  ;;  %v1194_v19 = vsel %vm530_vm8, %v1186_v12, %v1190_v7  ;;  %vm1315_vm8 = vcmask 293888  }
 0x26c   : > { %v1195_v10 = vmul.f32 %v1194_v19, %v2198_v22  ;;  %v1196_v34 = vmul.f32 %v1191_v18, %v2201_v23 }
 0x26e   : > { %v1209_v20 = vpop.permute.xlu0 %1208  ;;  %v1198_v21 = vpop.permute.xlu1 %1197 }
 0x26f   : > { %v1213_v24 = vsel %vm580_vm11, %v1212_v13, %v1209_v20  ;;  %v1216_v25 = vsel %vm580_vm11, %v1209_v20, %v1212_v13  ;;  %v1202_v26 = vsel %vm555_vm6, %v1201_v62, %v1198_v21  ;;  %v1205_v27 = vsel %vm555_vm6, %v1198_v21, %v1201_v62  ;;  %v1308_v20 = vld [vmem:[%s2505_s4] sm:$0xf] }
 0x270   : > { %v1217_v28 = vmul.f32 %v1216_v25, %v2222_v59  ;;  %v1218_v50 = vmul.f32 %v1213_v24, %v2225_v60  ;;  %v1206_v54 = vmul.f32 %v1205_v27, %v2186_v63  ;;  %v1207_v29 = vmul.f32 %v1202_v26, %v2189_v6 }
 0x272   : > { %v1278_v37 = vrot.slane %v1206_v54, 4  ;;  %v1279_v38 = vrot.slane %v1207_v29, 4  ;;  %v1235_v39 = vpop.permute.xlu1 %1234  ;;  %v1303_v60 = vsel %vm1042_vm4, %v1218_v50, %v1285_v33  ;;  %v1302_v6 = vsel %vm1042_vm4, %v1217_v28, %v1284_v30  ;;  %v1244_v55 = vpop.permute.xlu0 %1243  ;;  %v1817_v54 = vld [vmem:[%s2087_s26] sm:$0xff]  ;;  %s1846_s26 = scalar_lea.vmem %s2461_s11, 256 }
 0x273   : > { %v1236_v40 = vsel %vm695_vm13, %v1233_v61, %v1235_v39  ;;  %v1240_v41 = vsel %vm695_vm13, %v1235_v39, %v1233_v61  ;;  %v1400_v30 = vld [vmem:[%s2507_s6] sm:$0xf]  ;;  %p1847_p6 = scmp.ne.s32.totalorder %s2461_s11, %s1846_s26  ;;  %p1854_p3 = scmp.lt.s32.totalorder %s1852_s18, %s1846_s26 }
 0x274   : > { %v1301_v59 = vsel %vm1042_vm4, %v1196_v34, %v1279_v38  ;;  %v1300_v63 = vsel %vm1042_vm4, %v1195_v10, %v1278_v37  ;;  %v1241_v22 = vmul.f32 %v1236_v40, %v2244_v31  ;;  %v1242_v23 = vmul.f32 %v1240_v41, %v2247_v32 }
 0x275   : > { %v1723_v42 = vpack.c.bf16 %v1303_v60, %v1301_v59  ;;  %v1725_v9 = vpack.c.bf16 %v1302_v6, %v1300_v63  ;;  %v1231_v32 = vmul.f32 %v2349_v0, %v2237_v15  ;;  %v1496_v38 = vcombine.low %v1817_v54, %v1817_v54  ;;  %p1848_p10 = pnand %p1847_p6, %p2528_p9  ;;  %p1855_p4 = por %p1854_p3, %p1853_p2 }
 0x276   : > { %v1257_v43 = vpop.permute.xlu1 %1256  ;;  %v1290_v62 = vrot.slane %v1241_v22, 4  ;;  %v1291_v4 = vrot.slane %v1242_v23, 4  ;;  %v1266_v12 = vpop.permute.xlu0 %1265  ;;  %v1502_v22 = vld [vmem:[%s2509_s8] sm:$0xff] }
 0x277   : > { %v1258_v44 = vsel %vm795_vm0, %v1255_v3, %v1257_v43  ;;  %v1262_v48 = vsel %vm795_vm0, %v1257_v43, %v1255_v3  ;;  %1724 = vmatprep.subr.bf16.mxu1 %v1723_v42  ;;  %v1230_v3 = vmul.f32 %v2333_v51, %v2234_v14  ;;  %p1849_p12 = pneg %p1848_p10 }
 0x278   : > { %v1263_v56 = vmul.f32 %v1258_v44, %v2269_v35  ;;  %v1264_v61 = vmul.f32 %v1262_v48, %v2272_v36  ;;  %1726 = vmatpush1.bf16.msra.mxu1 %v1725_v9  ;;  %v1305_v16 = vsel %vm1042_vm4, %v1231_v32, %v1291_v4 }
 0x279   : > { %v1304_v18 = vsel %vm1042_vm4, %v1230_v3, %v1290_v62  ;;  %p1856_p7 = pnand %p1855_p4, %p1849_p12 }
 0x27a   : > { %v1246_v5 = vpop.permute.xlu1 %1245  ;;  %v1296_v8 = vrot.slane %v1263_v56, 4  ;;  %v1297_v11 = vrot.slane %v1264_v61, 4 }
 0x27b   : > { %v1247_v7 = vsel %vm770_vm2, %v1244_v55, %v1246_v5  ;;  %v1251_v31 = vsel %vm770_vm2, %v1246_v5, %v1244_v55 }
 0x27c   : > { %v1252_v35 = vmul.f32 %v1247_v7, %v2279_v46  ;;  %v1253_v36 = vmul.f32 %v1251_v31, %v2282_v47 }
 0x27e   : > { %v1268_v13 = vpop.permute.xlu1 %1267  ;;  %v1307_v17 = vsel %vm1042_vm4, %v1253_v36, %v1297_v11  ;;  %v1306_v19 = vsel %vm1042_vm4, %v1252_v35, %v1296_v8 }
 0x27f   : > { %v1273_v15 = vsel %vm820_vm3, %v1268_v13, %v1266_v12  ;;  %v1727_v0 = vpack.c.bf16 %v1307_v17, %v1305_v16  ;;  %v1729_v14 = vpack.c.bf16 %v1306_v19, %v1304_v18  ;;  %v1269_v46 = vsel %vm820_vm3, %v1266_v12, %v1268_v13 }
 0x280   : > { %v1275_v51 = vmul.f32 %v1273_v15, %v2292_v58  ;;  %v1274_v47 = vmul.f32 %v1269_v46, %v2289_v57  ;;  %v1401_v58 = vld [vmem:[%s2508_s7] sm:$0xf] }
 0x281   : > { %1728 = vmatprep.subr.bf16.mxu1 %v1727_v0  ;;  %1404 = vperm.xlu1 %1814, %v1401_v58  }
 0x282   : > { %1730 = vmatpush1.bf16.msra.mxu1 %v1729_v14 }
 0x283   : > { %1685 = vmatprep.subr.msk.mxu1 %vm1042_vm4, %v1275_v51 }
 0x286   : > { %1686 = vmatpush1.msk.msra.mxu1 %vm1042_vm4, %v1274_v47 }
 0x287   : > { %1687 = vmatmul.mubr.msk.f32.vlgmr.msra.gmra.mrb[0].mxu1 %vm1315_vm8, %v1308_v20  ;;  %v1313_v21 = vpop.permute.xlu0 %1312 }
 0x288   : > { %1481 = vmatprep.mubr.f32.mxu1 %v1939_v2 }
 0x28b   : > { %v1507_v45 = vpop.permute.xlu0 %1506 }
 0x300   : > { %v1405_v33 = vpop.permute.xlu1 %1404 }
 0x35a   : > { %v1391_v24 = vpop.f32.mrb[0].mxu1 }
 0x35b   : > { %v1392_v25 = vadd.f32 %v1391_v24, %v1313_v21  ;;  %v1393_v57 = vpop.f32.mrb[1].mxu1 }
 0x35c   : > { %v1394_v26 = vadd.f32 %v1393_v57, %v1313_v21 }
 0x35d   : > { %v1396_v27 = vmax.f32 %v1392_v25, 0.0 }
 0x35e   : > { %v1397_v28 = vmax.f32 %v1394_v26, 0.0 }
 0x35f   : > { %v1398_v29 = vadd.f32 %v1817_v54, %v1396_v27  ;;  %v1492_v34 = vrot.slane %v1396_v27, 4 }
 0x360   : > { %v1399_v50 = vadd.f32 %v1397_v28, %v2096_v1  ;;  %v1493_v39 = vrot.slane %v1397_v28, 4 }
 0x361   : > { %v1498_v60 = vsel %vm1042_vm4, %v1179_v49, %v1492_v34 }
 0x362   : > { %1688 = vmatprep.subr.msk.mxu1 %vm1042_vm4, %v1399_v50 }
 0x363   : > { %1689 = vmatpush1.msk.msra.mxu1 %vm1042_vm4, %v1398_v29 }
 0x364   : > { %1690 = vmatmul.mubr.msk.f32.vlgmr.msra.gmra.mrb[2].mxu1 %vm1407_vm10, %v1400_v30 }
 0x365   : > { %1576 = vmatprep.mubr.f32.mxu1 %v1939_v2  ;;  %v1499_v2 = vsel %vm1042_vm4, %v1180_v53, %v1493_v39 }
 0x437   : > { %v1483_v10 = vpop.f32.mrb[2].mxu1 }
 0x438   : > { %v1484_v37 = vadd.f32 %v1483_v10, %v1405_v33  ;;  %v1485_v1 = vpop.f32.mrb[3].mxu1 }
 0x439   : > { %v1486_v40 = vadd.f32 %v1485_v1, %v1405_v33 }
 0x43a   : > { %v1488_v41 = vmax.f32 %v1484_v37, 0.0 }
 0x43b   : > { %v1489_v59 = vmax.f32 %v1486_v40, 0.0 }
 0x43c   : > { %v1500_v63 = vsel %vm1042_vm4, %v1488_v41, %v1496_v38 }
 0x43d   : > { %v1733_v6 = vpack.c.bf16 %v1500_v63, %v1498_v60  ;;  %v1501_v42 = vsel %vm1042_vm4, %v1489_v59, %v1817_v54 }
 0x43e   : > { %v1731_v9 = vpack.c.bf16 %v1501_v42, %v1499_v2 }
 0x440   : > { %1732 = vmatprep.subr.bf16.mxu1 %v1731_v9 }
 0x441   : > { %1734 = vmatpush1.bf16.msra.mxu1 %v1733_v6 }
 0x444   : > { %1691 = vmatmul.mubr.msk.f32.vlgmr.msra.gmra.mrb[4].mxu1 %vm555_vm6, %v1502_v22 }
 0x517   : > { %v1578_v49 = vpop.f32.mrb[4].mxu1 }
 0x518   : > { %v1579_v23 = vadd.f32 %v1578_v49, %v1507_v45  ;;  %v1580_v52 = vpop.f32.mrb[5].mxu1 }
 0x519   : > { %v1581_v53 = vadd.f32 %v1580_v52, %v1507_v45 }
 0x51a   : > { %v1583_v43 = vmax.f32 %v1579_v23, 0.0 }
 0x51b   : > { %v1584_v44 = vmax.f32 %v1581_v53, 0.0 }
 0x51c   : > { %1585 = vst [vmem:[%s367_s29] sm:$0xff] %v1583_v43 }
 0x51d   : > { %1586 = vst [vmem:[%s367_s29 + $0x8] sm:$0xff] %v1584_v44 }
 0x51e   : > { %1859 = shalt.err (!%p1856_p7)
}
 0x51f   : > { %s1860_s25 = scalar_lea.hbm %s2459_s21, 256  ;;  %s1864_s27 = scalar_lea.hbm %s2511_s10, 512 }
 0x520   : > { %p1861_p8 = scmp.ne.s32.totalorder %s2459_s21, %s1860_s25  ;;  %p1865_p1 = scmp.lt.u32.totalorder %s2459_s21, %s2511_s10 }
 0x521   : > { %p1866_p0 = scmp.lt.u32.totalorder %s1864_s27, %s1860_s25  ;;  %p1868_p6 = scmp.lt.u32.totalorder %s1860_s25, %s2459_s21 }
 0x522   : > { %p1862_p11 = pnand %p1861_p8, %p2528_p9 }
 0x523   : > { %p1867_p5 = por %p1866_p0, %p1865_p1 }
 0x524   : > { %p1863_p13 = pneg %p1862_p11 }
 0x525   : > { %p1869_p10 = por %p1868_p6, %p1867_p5 }
 0x527   : > { %p1870_p12 = pnand %p1869_p10, %p1863_p13 }
 0x529   : > { %1873 = shalt.err (!%p1870_p12)
}
 0x52a   : > { %1739 = dma.vmem_to_hbm [thread:$0]  (%p2528_p9), %s2461_s11, 256, %s2459_s21, %s1588_s28  }
 0x52b PF: > { %p1751_p2 = scmp.ge.s32.totalorder %s1912_s16, 2  ;;  %s1614_s26 = sand.u32 1, %s1900_s13  }
 0x52c   : > { %p2529_p3 = scmp.ne.s32.totalorder %s2520_s24, 0  ;;  %s1615_s20 = scalar_lea.sflag [#allocation4], %s1614_s26 }
 0x52e   : > { %p1746_p4 = pnand %p1751_p2, %p2529_p3 }
 0x530   : > { %1895 = dma.done.wait (!%p1746_p4), %s1615_s20, 256  }
 0x531   : > { %1897 = vsyncadd (!%p1746_p4), %s1615_s20, 4294967040  ;;  %p21_p7 = scmp.ge.s32.totalorder %s2024_s19, 4   ;;  %s2530_s13 = smov %s1904_s14 }
 0x532   : > { %s2531_s14 = smov %s1908_s15  ;;  %s2532_s15 = smov %s2035_s22 }
 0x533   : > { %s2533_s16 = smov %s2024_s19  ;;  %23 = sbr.rel (!%p21_p7) target bundleno = 4 (0x4), region = 124 }
 0x53a   :  { %1620 = vsyncpa [#allocation3], 1 }
 0x53b   :  { %1622 = vsyncpa [#allocation3 + $0x1], 1 }
 0x53c   :  { %1623 = vsyncpa [#allocation4], 1 }
 0x53d   :  { %1625 = vsyncpa [#allocation4 + $0x1], 1 }

</bundles_post_ra>
